<compile_context>
chip_gen: v7x
topology: tpu7x:2x2x1
jax: 0.10.0
libtpu: 0.0.40
codegen_flags: <defaults>
</compile_context>

<pallas_src>
import functools
import math

import jax
import jax.numpy as jnp
from jax.experimental import pallas as pl
from jax.experimental.pallas import tpu as pltpu


def _dyn_attn52_kernel(query_ref, src_ref, trg_ref,
                       wq_ref, bq_ref,
                       wsk_ref, bsk_ref, wtk_ref, btk_ref,
                       wsv_ref, bsv_ref, wtv_ref, btv_ref,
                       woq_ref, woc_ref, bo_ref,
                       out_ref,
                       *, bb, L, S, T):
    H = wq_ref.shape[1]
    inv_sqrt_h = 1.0 / math.sqrt(H)

    query2 = query_ref[...]                         # (bb*L, Q)
    src2 = src_ref[...]                             # (bb*S, F)
    trg2 = trg_ref[...]                             # (bb*T, F)

    def proj(x2, w_ref, b_ref):
        # Single 2-D MXU matmul over all (batch*seq) rows of this block.
        return (jnp.dot(x2, w_ref[...], preferred_element_type=jnp.float32)
                + b_ref[...])

    # Projections (LinearAct, identity activation assumed).
    q = proj(query2, wq_ref, bq_ref).reshape(bb, L, H)     # (bb, L, H)
    sk = proj(src2, wsk_ref, bsk_ref).reshape(bb, S, H)    # (bb, S, H)
    tk = proj(trg2, wtk_ref, btk_ref).reshape(bb, T, H)    # (bb, T, H)
    sv = proj(src2, wsv_ref, bsv_ref).reshape(bb, S, H)    # (bb, S, H)
    tv = proj(trg2, wtv_ref, btv_ref).reshape(bb, T, H)    # (bb, T, H)

    # Build rel_key / rel_value over the flattened joint axis p = a*S + s:
    #   rel_key[b, p, :]   = tanh((sk[b, s, :] + tk[b, a, :]) / 2)
    #   rel_value[b, p, :] = tanh((sv[b, s, :] + tv[b, a, :]) / 2)
    # T is small and static -> unrolled; concat is along the 8-aligned sublane axis.
    rk_parts, rv_parts = [], []
    for a in range(T):
        tk_a = tk[:, a:a + 1, :]                           # (bb, 1, H) sublane bcast
        tv_a = tv[:, a:a + 1, :]
        rk_parts.append(jnp.tanh((sk + tk_a) * 0.5))       # (bb, S, H)
        rv_parts.append(jnp.tanh((sv + tv_a) * 0.5))
    rk = jnp.concatenate(rk_parts, axis=1)                 # (bb, T*S, H)
    rv = jnp.concatenate(rv_parts, axis=1)                 # (bb, T*S, H)

    # Joint attention logits over the flattened (t, s) axis: one batched matmul.
    w = jnp.einsum('blh,bph->blp', q, rk,
                   preferred_element_type=jnp.float32) * inv_sqrt_h  # (bb, L, P)

    # Softmax over the single flattened axis, normalization deferred.
    m = w.max(axis=-1, keepdims=True)                      # (bb, L, 1)
    e = jnp.exp(w - m)                                     # (bb, L, P)
    denom = e.sum(axis=-1, keepdims=True)                  # (bb, L, 1)

    ctx = jnp.einsum('blp,bph->blh', e, rv,
                     preferred_element_type=jnp.float32)   # (bb, L, H)
    ctx = ctx * pl.reciprocal(denom, approx=False)
    ctx2 = ctx.reshape(bb * L, H)

    # out_linear(ReLU) on concat(query, ctx) — split matmuls, no lane concat.
    out = (jnp.dot(query2, woq_ref[...], preferred_element_type=jnp.float32)
           + jnp.dot(ctx2, woc_ref[...], preferred_element_type=jnp.float32)
           + bo_ref[...])
    out_ref[...] = jnp.maximum(out, 0.0).astype(out_ref.dtype)


def dynamic_attention52(query, src, trg, params, *, block_b=8):
    B, L, Q = query.shape
    _, S, F = src.shape
    _, T, _ = trg.shape
    H = params["wq"].shape[1]
    O = params["woq"].shape[1]

    # Batch-block size: largest divisor of B that is <= block_b.
    bb = min(block_b, B)
    while B % bb != 0:
        bb -= 1

    # Flatten (batch, seq) -> rows outside the kernel (free) so the kernel works
    # on dense 2-D slabs.
    query2 = query.reshape(B * L, Q)
    src2 = src.reshape(B * S, F)
    trg2 = trg.reshape(B * T, F)

    kernel = functools.partial(_dyn_attn52_kernel, bb=bb, L=L, S=S, T=T)

    grid_spec = pltpu.PrefetchScalarGridSpec(
        num_scalar_prefetch=0,
        grid=(B // bb,),
        in_specs=[
            pl.BlockSpec((bb * L, Q), lambda b: (b, 0)),   # query  (flattened)
            pl.BlockSpec((bb * S, F), lambda b: (b, 0)),   # src    (flattened)
            pl.BlockSpec((bb * T, F), lambda b: (b, 0)),   # trg    (flattened)
            pl.BlockSpec((Q, H), lambda b: (0, 0)),        # W_query
            pl.BlockSpec((1, H), lambda b: (0, 0)),        # b_query
            pl.BlockSpec((F, H), lambda b: (0, 0)),        # W_src_key
            pl.BlockSpec((1, H), lambda b: (0, 0)),        # b_src_key
            pl.BlockSpec((F, H), lambda b: (0, 0)),        # W_trg_key
            pl.BlockSpec((1, H), lambda b: (0, 0)),        # b_trg_key
            pl.BlockSpec((F, H), lambda b: (0, 0)),        # W_src_value
            pl.BlockSpec((1, H), lambda b: (0, 0)),        # b_src_value
            pl.BlockSpec((F, H), lambda b: (0, 0)),        # W_trg_value
            pl.BlockSpec((1, H), lambda b: (0, 0)),        # b_trg_value
            pl.BlockSpec((Q, O), lambda b: (0, 0)),        # W_out[:Q]  (query part)
            pl.BlockSpec((H, O), lambda b: (0, 0)),        # W_out[Q:]  (ctx part)
            pl.BlockSpec((1, O), lambda b: (0, 0)),        # b_out
        ],
        out_specs=pl.BlockSpec((bb * L, O), lambda b: (b, 0)),
    )

    out2 = pl.pallas_call(
        kernel,
        out_shape=jax.ShapeDtypeStruct((B * L, O), jnp.float32),
        grid_spec=grid_spec,
        compiler_params=pltpu.CompilerParams(
            dimension_semantics=("parallel",)),   # batch blocks are independent
    )(query2, src2, trg2,
      params["wq"], params["bq"],
      params["wsk"], params["bsk"], params["wtk"], params["btk"],
      params["wsv"], params["bsv"], params["wtv"], params["btv"],
      params["woq"], params["woc"], params["bo"])
    return out2.reshape(B, L, O)


def init_params(key, query_dim, feat_dim, hid_dim, out_dim):
    """Deterministic synthetic parameters (PyTorch-Linear-style uniform init)."""
    def lin(k, fan_in, fan_out):
        bound = 1.0 / math.sqrt(fan_in)
        kw, kb = jax.random.split(k)
        w = jax.random.uniform(kw, (fan_in, fan_out), jnp.float32, -bound, bound)
        b = jax.random.uniform(kb, (1, fan_out), jnp.float32, -bound, bound)
        return w, b

    keys = jax.random.split(key, 6)
    wq, bq = lin(keys[0], query_dim, hid_dim)
    wsk, bsk = lin(keys[1], feat_dim, hid_dim)
    wtk, btk = lin(keys[2], feat_dim, hid_dim)
    wsv, bsv = lin(keys[3], feat_dim, hid_dim)
    wtv, btv = lin(keys[4], feat_dim, hid_dim)
    wo, bo = lin(keys[5], hid_dim + query_dim, out_dim)
    return dict(
        wq=wq, bq=bq,
        wsk=wsk, bsk=bsk, wtk=wtk, btk=btk,
        wsv=wsv, bsv=bsv, wtv=wtv, btv=btv,
        woq=wo[:query_dim],        # rows matching the `query` part of the concat
        woc=wo[query_dim:],        # rows matching the `ctx` part of the concat
        bo=bo,
    )


def reference(query, src, trg, p):
    """Pure-JAX reference matching the PyTorch forward (requires S == T)."""
    H = p["wq"].shape[1]
    q = query @ p["wq"] + p["bq"]
    sk = src @ p["wsk"] + p["bsk"]
    tk = trg @ p["wtk"] + p["btk"]
    sv = src @ p["wsv"] + p["bsv"]
    tv = trg @ p["wtv"] + p["btv"]
    # PyTorch: s_key.unsqueeze(1) + t_key.unsqueeze(2) -> (b, t, s, h)
    rel_key = jnp.tanh((sk[:, None, :, :] + tk[:, :, None, :]) * 0.5)
    w = jnp.einsum("blk,btsk->blts", q, rel_key) / math.sqrt(H)
    B, L, T, S = w.shape
    w = jax.nn.softmax(w.reshape(B, L, -1), axis=-1).reshape(B, L, T, S)
    rel_value = jnp.tanh((sv[:, None, :, :] + tv[:, :, None, :]) * 0.5)
    ctx = jnp.einsum("blts,btsk->blk", w, rel_value)
    x = jnp.concatenate([query, ctx], axis=-1)
    wout = jnp.concatenate([p["woq"], p["woc"]], axis=0)
    return jax.nn.relu(x @ wout + p["bo"])


if __name__ == "__main__":
    # S == T (the PyTorch module's view/einsum only supports square (s, t)).
    B, L, S, T = 4, 8, 8, 8
    Q_DIM, F_DIM, H_DIM = 16, 24, 32
    O_DIM = H_DIM  # out_dim defaults to hid_dim

    key = jax.random.PRNGKey(0)
    k1, k2, k3, kp = jax.random.split(key, 4)
    query = jax.random.normal(k1, (B, L, Q_DIM), jnp.float32)
    src = jax.random.normal(k2, (B, S, F_DIM), jnp.float32)
    trg = jax.random.normal(k3, (B, T, F_DIM), jnp.float32)
    params = init_params(kp, Q_DIM, F_DIM, H_DIM, O_DIM)

    out = dynamic_attention52(query, src, trg, params)
    out = jax.block_until_ready(out)

    ref = reference(query, src, trg, params)
    assert out.shape == (B, L, O_DIM)
    if not jnp.allclose(out, ref, rtol=1e-3, atol=1e-3):
        raise AssertionError("Pallas kernel output does not match JAX reference")
    print("KERNEL_OK")
</pallas_src>

<mosaic_0001>
module attributes {stable_mosaic.version = 11 : i64} {
  func.func @_dyn_attn52_kernel(%arg0: i32, %arg1: memref<32x16xf32, #tpu.memory_space<vmem>>, %arg2: memref<32x24xf32, #tpu.memory_space<vmem>>, %arg3: memref<32x24xf32, #tpu.memory_space<vmem>>, %arg4: memref<16x32xf32, #tpu.memory_space<vmem>>, %arg5: memref<1x32xf32, #tpu.memory_space<vmem>>, %arg6: memref<24x32xf32, #tpu.memory_space<vmem>>, %arg7: memref<1x32xf32, #tpu.memory_space<vmem>>, %arg8: memref<24x32xf32, #tpu.memory_space<vmem>>, %arg9: memref<1x32xf32, #tpu.memory_space<vmem>>, %arg10: memref<24x32xf32, #tpu.memory_space<vmem>>, %arg11: memref<1x32xf32, #tpu.memory_space<vmem>>, %arg12: memref<24x32xf32, #tpu.memory_space<vmem>>, %arg13: memref<1x32xf32, #tpu.memory_space<vmem>>, %arg14: memref<16x32xf32, #tpu.memory_space<vmem>>, %arg15: memref<32x32xf32, #tpu.memory_space<vmem>>, %arg16: memref<1x32xf32, #tpu.memory_space<vmem>>, %arg17: memref<32x32xf32, #tpu.memory_space<vmem>>) attributes {dimension_semantics = [#tpu.dimension_semantics<parallel>], iteration_bounds = array<i64: 1>, scalar_prefetch = 0 : i64, scratch_operands = 0 : i64, tpu.core_type = #tpu.core_type<tc>, window_params = [{transform_indices = @transform_0, window_bounds = array<i64: 32, 16>}, {transform_indices = @transform_1, window_bounds = array<i64: 32, 24>}, {transform_indices = @transform_2, window_bounds = array<i64: 32, 24>}, {pipeline_mode = #tpu.pipeline_mode<synchronous>, transform_indices = @transform_3, window_bounds = array<i64: 16, 32>}, {pipeline_mode = #tpu.pipeline_mode<synchronous>, transform_indices = @transform_4, window_bounds = array<i64: 1, 32>}, {pipeline_mode = #tpu.pipeline_mode<synchronous>, transform_indices = @transform_5, window_bounds = array<i64: 24, 32>}, {pipeline_mode = #tpu.pipeline_mode<synchronous>, transform_indices = @transform_6, window_bounds = array<i64: 1, 32>}, {pipeline_mode = #tpu.pipeline_mode<synchronous>, transform_indices = @transform_7, window_bounds = array<i64: 24, 32>}, {pipeline_mode = #tpu.pipeline_mode<synchronous>, transform_indices = @transform_8, window_bounds = array<i64: 1, 32>}, {pipeline_mode = #tpu.pipeline_mode<synchronous>, transform_indices = @transform_9, window_bounds = array<i64: 24, 32>}, {pipeline_mode = #tpu.pipeline_mode<synchronous>, transform_indices = @transform_10, window_bounds = array<i64: 1, 32>}, {pipeline_mode = #tpu.pipeline_mode<synchronous>, transform_indices = @transform_11, window_bounds = array<i64: 24, 32>}, {pipeline_mode = #tpu.pipeline_mode<synchronous>, transform_indices = @transform_12, window_bounds = array<i64: 1, 32>}, {pipeline_mode = #tpu.pipeline_mode<synchronous>, transform_indices = @transform_13, window_bounds = array<i64: 16, 32>}, {pipeline_mode = #tpu.pipeline_mode<synchronous>, transform_indices = @transform_14, window_bounds = array<i64: 32, 32>}, {pipeline_mode = #tpu.pipeline_mode<synchronous>, transform_indices = @transform_15, window_bounds = array<i64: 1, 32>}, {transform_indices = @transform_16, window_bounds = array<i64: 32, 32>}]} {
    %c0 = arith.constant 0 : index
    %c0_0 = arith.constant 0 : index
    %0 = vector.load %arg1[%c0, %c0_0] : memref<32x16xf32, #tpu.memory_space<vmem>>, vector<32x16xf32>
    %c0_1 = arith.constant 0 : index
    %c0_2 = arith.constant 0 : index
    %1 = vector.load %arg2[%c0_1, %c0_2] : memref<32x24xf32, #tpu.memory_space<vmem>>, vector<32x24xf32>
    %c0_3 = arith.constant 0 : index
    %c0_4 = arith.constant 0 : index
    %2 = vector.load %arg3[%c0_3, %c0_4] : memref<32x24xf32, #tpu.memory_space<vmem>>, vector<32x24xf32>
    %c0_5 = arith.constant 0 : index
    %c0_6 = arith.constant 0 : index
    %3 = vector.load %arg4[%c0_5, %c0_6] : memref<16x32xf32, #tpu.memory_space<vmem>>, vector<16x32xf32>
    %cst = arith.constant dense<0.000000e+00> : vector<32x32xf32>
    %4 = tpu.matmul %0, %3, %cst {dimension_numbers = #tpu.dot_dimension_numbers<[1], [0], [0], [1], [0, 0, 1, 1], [], []>} : vector<32x16xf32>, vector<16x32xf32>, vector<32x32xf32> -> vector<32x32xf32>
    %c0_7 = arith.constant 0 : index
    %c0_8 = arith.constant 0 : index
    %5 = vector.load %arg5[%c0_7, %c0_8] : memref<1x32xf32, #tpu.memory_space<vmem>>, vector<1x32xf32>
    %6 = vector.broadcast %5 : vector<1x32xf32> to vector<32x32xf32>
    %7 = arith.addf %4, %6 : vector<32x32xf32>
    %8 = vector.shape_cast %7 : vector<32x32xf32> to vector<4x8x32xf32>
    %c0_9 = arith.constant 0 : index
    %c0_10 = arith.constant 0 : index
    %9 = vector.load %arg6[%c0_9, %c0_10] : memref<24x32xf32, #tpu.memory_space<vmem>>, vector<24x32xf32>
    %cst_11 = arith.constant dense<0.000000e+00> : vector<32x32xf32>
    %10 = tpu.matmul %1, %9, %cst_11 {dimension_numbers = #tpu.dot_dimension_numbers<[1], [0], [0], [1], [0, 0, 1, 1], [], []>} : vector<32x24xf32>, vector<24x32xf32>, vector<32x32xf32> -> vector<32x32xf32>
    %c0_12 = arith.constant 0 : index
    %c0_13 = arith.constant 0 : index
    %11 = vector.load %arg7[%c0_12, %c0_13] : memref<1x32xf32, #tpu.memory_space<vmem>>, vector<1x32xf32>
    %12 = vector.broadcast %11 : vector<1x32xf32> to vector<32x32xf32>
    %13 = arith.addf %10, %12 : vector<32x32xf32>
    %14 = vector.shape_cast %13 : vector<32x32xf32> to vector<4x8x32xf32>
    %c0_14 = arith.constant 0 : index
    %c0_15 = arith.constant 0 : index
    %15 = vector.load %arg8[%c0_14, %c0_15] : memref<24x32xf32, #tpu.memory_space<vmem>>, vector<24x32xf32>
    %cst_16 = arith.constant dense<0.000000e+00> : vector<32x32xf32>
    %16 = tpu.matmul %2, %15, %cst_16 {dimension_numbers = #tpu.dot_dimension_numbers<[1], [0], [0], [1], [0, 0, 1, 1], [], []>} : vector<32x24xf32>, vector<24x32xf32>, vector<32x32xf32> -> vector<32x32xf32>
    %c0_17 = arith.constant 0 : index
    %c0_18 = arith.constant 0 : index
    %17 = vector.load %arg9[%c0_17, %c0_18] : memref<1x32xf32, #tpu.memory_space<vmem>>, vector<1x32xf32>
    %18 = vector.broadcast %17 : vector<1x32xf32> to vector<32x32xf32>
    %19 = arith.addf %16, %18 : vector<32x32xf32>
    %20 = vector.shape_cast %19 : vector<32x32xf32> to vector<4x8x32xf32>
    %c0_19 = arith.constant 0 : index
    %c0_20 = arith.constant 0 : index
    %21 = vector.load %arg10[%c0_19, %c0_20] : memref<24x32xf32, #tpu.memory_space<vmem>>, vector<24x32xf32>
    %cst_21 = arith.constant dense<0.000000e+00> : vector<32x32xf32>
    %22 = tpu.matmul %1, %21, %cst_21 {dimension_numbers = #tpu.dot_dimension_numbers<[1], [0], [0], [1], [0, 0, 1, 1], [], []>} : vector<32x24xf32>, vector<24x32xf32>, vector<32x32xf32> -> vector<32x32xf32>
    %c0_22 = arith.constant 0 : index
    %c0_23 = arith.constant 0 : index
    %23 = vector.load %arg11[%c0_22, %c0_23] : memref<1x32xf32, #tpu.memory_space<vmem>>, vector<1x32xf32>
    %24 = vector.broadcast %23 : vector<1x32xf32> to vector<32x32xf32>
    %25 = arith.addf %22, %24 : vector<32x32xf32>
    %26 = vector.shape_cast %25 : vector<32x32xf32> to vector<4x8x32xf32>
    %c0_24 = arith.constant 0 : index
    %c0_25 = arith.constant 0 : index
    %27 = vector.load %arg12[%c0_24, %c0_25] : memref<24x32xf32, #tpu.memory_space<vmem>>, vector<24x32xf32>
    %cst_26 = arith.constant dense<0.000000e+00> : vector<32x32xf32>
    %28 = tpu.matmul %2, %27, %cst_26 {dimension_numbers = #tpu.dot_dimension_numbers<[1], [0], [0], [1], [0, 0, 1, 1], [], []>} : vector<32x24xf32>, vector<24x32xf32>, vector<32x32xf32> -> vector<32x32xf32>
    %c0_27 = arith.constant 0 : index
    %c0_28 = arith.constant 0 : index
    %29 = vector.load %arg13[%c0_27, %c0_28] : memref<1x32xf32, #tpu.memory_space<vmem>>, vector<1x32xf32>
    %30 = vector.broadcast %29 : vector<1x32xf32> to vector<32x32xf32>
    %31 = arith.addf %28, %30 : vector<32x32xf32>
    %32 = vector.shape_cast %31 : vector<32x32xf32> to vector<4x8x32xf32>
    %33 = vector.extract_strided_slice %20 {offsets = [0, 0, 0], sizes = [4, 1, 32], strides = [1, 1, 1]} : vector<4x8x32xf32> to vector<4x1x32xf32>
    %34 = vector.extract_strided_slice %32 {offsets = [0, 0, 0], sizes = [4, 1, 32], strides = [1, 1, 1]} : vector<4x8x32xf32> to vector<4x1x32xf32>
    %35 = vector.broadcast %33 : vector<4x1x32xf32> to vector<4x8x32xf32>
    %36 = arith.addf %14, %35 : vector<4x8x32xf32>
    %cst_29 = arith.constant 5.000000e-01 : f32
    %37 = vector.broadcast %cst_29 : f32 to vector<4x8x32xf32>
    %38 = arith.mulf %36, %37 : vector<4x8x32xf32>
    %39 = math.tanh %38 : vector<4x8x32xf32>
    %40 = vector.broadcast %34 : vector<4x1x32xf32> to vector<4x8x32xf32>
    %41 = arith.addf %26, %40 : vector<4x8x32xf32>
    %cst_30 = arith.constant 5.000000e-01 : f32
    %42 = vector.broadcast %cst_30 : f32 to vector<4x8x32xf32>
    %43 = arith.mulf %41, %42 : vector<4x8x32xf32>
    %44 = math.tanh %43 : vector<4x8x32xf32>
    %45 = vector.extract_strided_slice %20 {offsets = [0, 1, 0], sizes = [4, 1, 32], strides = [1, 1, 1]} : vector<4x8x32xf32> to vector<4x1x32xf32>
    %46 = vector.extract_strided_slice %32 {offsets = [0, 1, 0], sizes = [4, 1, 32], strides = [1, 1, 1]} : vector<4x8x32xf32> to vector<4x1x32xf32>
    %47 = vector.broadcast %45 : vector<4x1x32xf32> to vector<4x8x32xf32>
    %48 = arith.addf %14, %47 : vector<4x8x32xf32>
    %cst_31 = arith.constant 5.000000e-01 : f32
    %49 = vector.broadcast %cst_31 : f32 to vector<4x8x32xf32>
    %50 = arith.mulf %48, %49 : vector<4x8x32xf32>
    %51 = math.tanh %50 : vector<4x8x32xf32>
    %52 = vector.broadcast %46 : vector<4x1x32xf32> to vector<4x8x32xf32>
    %53 = arith.addf %26, %52 : vector<4x8x32xf32>
    %cst_32 = arith.constant 5.000000e-01 : f32
    %54 = vector.broadcast %cst_32 : f32 to vector<4x8x32xf32>
    %55 = arith.mulf %53, %54 : vector<4x8x32xf32>
    %56 = math.tanh %55 : vector<4x8x32xf32>
    %57 = vector.extract_strided_slice %20 {offsets = [0, 2, 0], sizes = [4, 1, 32], strides = [1, 1, 1]} : vector<4x8x32xf32> to vector<4x1x32xf32>
    %58 = vector.extract_strided_slice %32 {offsets = [0, 2, 0], sizes = [4, 1, 32], strides = [1, 1, 1]} : vector<4x8x32xf32> to vector<4x1x32xf32>
    %59 = vector.broadcast %57 : vector<4x1x32xf32> to vector<4x8x32xf32>
    %60 = arith.addf %14, %59 : vector<4x8x32xf32>
    %cst_33 = arith.constant 5.000000e-01 : f32
    %61 = vector.broadcast %cst_33 : f32 to vector<4x8x32xf32>
    %62 = arith.mulf %60, %61 : vector<4x8x32xf32>
    %63 = math.tanh %62 : vector<4x8x32xf32>
    %64 = vector.broadcast %58 : vector<4x1x32xf32> to vector<4x8x32xf32>
    %65 = arith.addf %26, %64 : vector<4x8x32xf32>
    %cst_34 = arith.constant 5.000000e-01 : f32
    %66 = vector.broadcast %cst_34 : f32 to vector<4x8x32xf32>
    %67 = arith.mulf %65, %66 : vector<4x8x32xf32>
    %68 = math.tanh %67 : vector<4x8x32xf32>
    %69 = vector.extract_strided_slice %20 {offsets = [0, 3, 0], sizes = [4, 1, 32], strides = [1, 1, 1]} : vector<4x8x32xf32> to vector<4x1x32xf32>
    %70 = vector.extract_strided_slice %32 {offsets = [0, 3, 0], sizes = [4, 1, 32], strides = [1, 1, 1]} : vector<4x8x32xf32> to vector<4x1x32xf32>
    %71 = vector.broadcast %69 : vector<4x1x32xf32> to vector<4x8x32xf32>
    %72 = arith.addf %14, %71 : vector<4x8x32xf32>
    %cst_35 = arith.constant 5.000000e-01 : f32
    %73 = vector.broadcast %cst_35 : f32 to vector<4x8x32xf32>
    %74 = arith.mulf %72, %73 : vector<4x8x32xf32>
    %75 = math.tanh %74 : vector<4x8x32xf32>
    %76 = vector.broadcast %70 : vector<4x1x32xf32> to vector<4x8x32xf32>
    %77 = arith.addf %26, %76 : vector<4x8x32xf32>
    %cst_36 = arith.constant 5.000000e-01 : f32
    %78 = vector.broadcast %cst_36 : f32 to vector<4x8x32xf32>
    %79 = arith.mulf %77, %78 : vector<4x8x32xf32>
    %80 = math.tanh %79 : vector<4x8x32xf32>
    %81 = vector.extract_strided_slice %20 {offsets = [0, 4, 0], sizes = [4, 1, 32], strides = [1, 1, 1]} : vector<4x8x32xf32> to vector<4x1x32xf32>
    %82 = vector.extract_strided_slice %32 {offsets = [0, 4, 0], sizes = [4, 1, 32], strides = [1, 1, 1]} : vector<4x8x32xf32> to vector<4x1x32xf32>
    %83 = vector.broadcast %81 : vector<4x1x32xf32> to vector<4x8x32xf32>
    %84 = arith.addf %14, %83 : vector<4x8x32xf32>
    %cst_37 = arith.constant 5.000000e-01 : f32
    %85 = vector.broadcast %cst_37 : f32 to vector<4x8x32xf32>
    %86 = arith.mulf %84, %85 : vector<4x8x32xf32>
    %87 = math.tanh %86 : vector<4x8x32xf32>
    %88 = vector.broadcast %82 : vector<4x1x32xf32> to vector<4x8x32xf32>
    %89 = arith.addf %26, %88 : vector<4x8x32xf32>
    %cst_38 = arith.constant 5.000000e-01 : f32
    %90 = vector.broadcast %cst_38 : f32 to vector<4x8x32xf32>
    %91 = arith.mulf %89, %90 : vector<4x8x32xf32>
    %92 = math.tanh %91 : vector<4x8x32xf32>
    %93 = vector.extract_strided_slice %20 {offsets = [0, 5, 0], sizes = [4, 1, 32], strides = [1, 1, 1]} : vector<4x8x32xf32> to vector<4x1x32xf32>
    %94 = vector.extract_strided_slice %32 {offsets = [0, 5, 0], sizes = [4, 1, 32], strides = [1, 1, 1]} : vector<4x8x32xf32> to vector<4x1x32xf32>
    %95 = vector.broadcast %93 : vector<4x1x32xf32> to vector<4x8x32xf32>
    %96 = arith.addf %14, %95 : vector<4x8x32xf32>
    %cst_39 = arith.constant 5.000000e-01 : f32
    %97 = vector.broadcast %cst_39 : f32 to vector<4x8x32xf32>
    %98 = arith.mulf %96, %97 : vector<4x8x32xf32>
    %99 = math.tanh %98 : vector<4x8x32xf32>
    %100 = vector.broadcast %94 : vector<4x1x32xf32> to vector<4x8x32xf32>
    %101 = arith.addf %26, %100 : vector<4x8x32xf32>
    %cst_40 = arith.constant 5.000000e-01 : f32
    %102 = vector.broadcast %cst_40 : f32 to vector<4x8x32xf32>
    %103 = arith.mulf %101, %102 : vector<4x8x32xf32>
    %104 = math.tanh %103 : vector<4x8x32xf32>
    %105 = vector.extract_strided_slice %20 {offsets = [0, 6, 0], sizes = [4, 1, 32], strides = [1, 1, 1]} : vector<4x8x32xf32> to vector<4x1x32xf32>
    %106 = vector.extract_strided_slice %32 {offsets = [0, 6, 0], sizes = [4, 1, 32], strides = [1, 1, 1]} : vector<4x8x32xf32> to vector<4x1x32xf32>
    %107 = vector.broadcast %105 : vector<4x1x32xf32> to vector<4x8x32xf32>
    %108 = arith.addf %14, %107 : vector<4x8x32xf32>
    %cst_41 = arith.constant 5.000000e-01 : f32
    %109 = vector.broadcast %cst_41 : f32 to vector<4x8x32xf32>
    %110 = arith.mulf %108, %109 : vector<4x8x32xf32>
    %111 = math.tanh %110 : vector<4x8x32xf32>
    %112 = vector.broadcast %106 : vector<4x1x32xf32> to vector<4x8x32xf32>
    %113 = arith.addf %26, %112 : vector<4x8x32xf32>
    %cst_42 = arith.constant 5.000000e-01 : f32
    %114 = vector.broadcast %cst_42 : f32 to vector<4x8x32xf32>
    %115 = arith.mulf %113, %114 : vector<4x8x32xf32>
    %116 = math.tanh %115 : vector<4x8x32xf32>
    %117 = vector.extract_strided_slice %20 {offsets = [0, 7, 0], sizes = [4, 1, 32], strides = [1, 1, 1]} : vector<4x8x32xf32> to vector<4x1x32xf32>
    %118 = vector.extract_strided_slice %32 {offsets = [0, 7, 0], sizes = [4, 1, 32], strides = [1, 1, 1]} : vector<4x8x32xf32> to vector<4x1x32xf32>
    %119 = vector.broadcast %117 : vector<4x1x32xf32> to vector<4x8x32xf32>
    %120 = arith.addf %14, %119 : vector<4x8x32xf32>
    %cst_43 = arith.constant 5.000000e-01 : f32
    %121 = vector.broadcast %cst_43 : f32 to vector<4x8x32xf32>
    %122 = arith.mulf %120, %121 : vector<4x8x32xf32>
    %123 = math.tanh %122 : vector<4x8x32xf32>
    %124 = vector.broadcast %118 : vector<4x1x32xf32> to vector<4x8x32xf32>
    %125 = arith.addf %26, %124 : vector<4x8x32xf32>
    %cst_44 = arith.constant 5.000000e-01 : f32
    %126 = vector.broadcast %cst_44 : f32 to vector<4x8x32xf32>
    %127 = arith.mulf %125, %126 : vector<4x8x32xf32>
    %128 = math.tanh %127 : vector<4x8x32xf32>
    %129 = tpu.concatenate %39, %51, %63, %75, %87, %99, %111, %123 in 1 : vector<4x8x32xf32>, vector<4x8x32xf32>, vector<4x8x32xf32>, vector<4x8x32xf32>, vector<4x8x32xf32>, vector<4x8x32xf32>, vector<4x8x32xf32>, vector<4x8x32xf32> -> vector<4x64x32xf32>
    %130 = tpu.concatenate %44, %56, %68, %80, %92, %104, %116, %128 in 1 : vector<4x8x32xf32>, vector<4x8x32xf32>, vector<4x8x32xf32>, vector<4x8x32xf32>, vector<4x8x32xf32>, vector<4x8x32xf32>, vector<4x8x32xf32>, vector<4x8x32xf32> -> vector<4x64x32xf32>
    "tpu.trace_start"() <{level = 10 : i32, message = "blh,bph->blp"}> : () -> ()
    %cst_45 = arith.constant dense<0.000000e+00> : vector<4x8x64xf32>
    %131 = tpu.matmul %8, %129, %cst_45 {dimension_numbers = #tpu.dot_dimension_numbers<[2], [2], [1], [1], [0, 0, 0, 1, 1, 1], [0], [0]>} : vector<4x8x32xf32>, vector<4x64x32xf32>, vector<4x8x64xf32> -> vector<4x8x64xf32>
    "tpu.trace_stop"() : () -> ()
    %cst_46 = arith.constant 0.176776692 : f32
    %132 = vector.broadcast %cst_46 : f32 to vector<4x8x64xf32>
    %133 = arith.mulf %131, %132 : vector<4x8x64xf32>
    %cst_47 = arith.constant dense<0xFF800000> : vector<4x8xf32>
    %134 = vector.multi_reduction <maximumf>, %133, %cst_47 [2] : vector<4x8x64xf32> to vector<4x8xf32>
    %135 = vector.shape_cast %134 : vector<4x8xf32> to vector<4x8x1xf32>
    %136 = vector.broadcast %135 : vector<4x8x1xf32> to vector<4x8x64xf32>
    %137 = arith.subf %133, %136 : vector<4x8x64xf32>
    %138 = math.exp %137 : vector<4x8x64xf32>
    %cst_48 = arith.constant dense<0.000000e+00> : vector<4x8xf32>
    %139 = vector.multi_reduction <add>, %138, %cst_48 [2] : vector<4x8x64xf32> to vector<4x8xf32>
    %140 = vector.shape_cast %139 : vector<4x8xf32> to vector<4x8x1xf32>
    "tpu.trace_start"() <{level = 10 : i32, message = "blp,bph->blh"}> : () -> ()
    %cst_49 = arith.constant dense<0.000000e+00> : vector<4x8x32xf32>
    %141 = tpu.matmul %138, %130, %cst_49 {dimension_numbers = #tpu.dot_dimension_numbers<[2], [1], [1], [2], [0, 0, 0, 1, 1, 2], [0], [0]>} : vector<4x8x64xf32>, vector<4x64x32xf32>, vector<4x8x32xf32> -> vector<4x8x32xf32>
    "tpu.trace_stop"() : () -> ()
    %142 = tpu.reciprocal %140 : vector<4x8x1xf32> -> vector<4x8x1xf32>
    %143 = vector.broadcast %142 : vector<4x8x1xf32> to vector<4x8x32xf32>
    %144 = arith.mulf %141, %143 : vector<4x8x32xf32>
    %145 = vector.shape_cast %144 : vector<4x8x32xf32> to vector<32x32xf32>
    %c0_50 = arith.constant 0 : index
    %c0_51 = arith.constant 0 : index
    %146 = vector.load %arg14[%c0_50, %c0_51] : memref<16x32xf32, #tpu.memory_space<vmem>>, vector<16x32xf32>
    %cst_52 = arith.constant dense<0.000000e+00> : vector<32x32xf32>
    %147 = tpu.matmul %0, %146, %cst_52 {dimension_numbers = #tpu.dot_dimension_numbers<[1], [0], [0], [1], [0, 0, 1, 1], [], []>} : vector<32x16xf32>, vector<16x32xf32>, vector<32x32xf32> -> vector<32x32xf32>
    %c0_53 = arith.constant 0 : index
    %c0_54 = arith.constant 0 : index
    %148 = vector.load %arg15[%c0_53, %c0_54] : memref<32x32xf32, #tpu.memory_space<vmem>>, vector<32x32xf32>
    %cst_55 = arith.constant dense<0.000000e+00> : vector<32x32xf32>
    %149 = tpu.matmul %145, %148, %cst_55 {dimension_numbers = #tpu.dot_dimension_numbers<[1], [0], [0], [1], [0, 0, 1, 1], [], []>} : vector<32x32xf32>, vector<32x32xf32>, vector<32x32xf32> -> vector<32x32xf32>
    %150 = arith.addf %147, %149 : vector<32x32xf32>
    %c0_56 = arith.constant 0 : index
    %c0_57 = arith.constant 0 : index
    %151 = vector.load %arg16[%c0_56, %c0_57] : memref<1x32xf32, #tpu.memory_space<vmem>>, vector<1x32xf32>
    %152 = vector.broadcast %151 : vector<1x32xf32> to vector<32x32xf32>
    %153 = arith.addf %150, %152 : vector<32x32xf32>
    %cst_58 = arith.constant 0.000000e+00 : f32
    %154 = vector.broadcast %cst_58 : f32 to vector<32x32xf32>
    %155 = arith.maximumf %153, %154 : vector<32x32xf32>
    %c0_59 = arith.constant 0 : index
    %c0_60 = arith.constant 0 : index
    %156 = vector.load %arg17[%c0_59, %c0_60] : memref<32x32xf32, #tpu.memory_space<vmem>>, vector<32x32xf32>
    tpu.vector_store %arg17[%c0_59, %c0_60], %155 {strides = array<i32>} : memref<32x32xf32, #tpu.memory_space<vmem>>, vector<32x32xf32>,
    return
  }
  func.func @transform_0(%arg0: i32) -> (i32, i32) {
    %c0_i32 = arith.constant 0 : i32
    %c0_i32_0 = arith.constant 0 : i32
    return %arg0, %c0_i32 : i32, i32
  }
  func.func @transform_1(%arg0: i32) -> (i32, i32) {
    %c0_i32 = arith.constant 0 : i32
    %c0_i32_0 = arith.constant 0 : i32
    return %arg0, %c0_i32 : i32, i32
  }
  func.func @transform_2(%arg0: i32) -> (i32, i32) {
    %c0_i32 = arith.constant 0 : i32
    %c0_i32_0 = arith.constant 0 : i32
    return %arg0, %c0_i32 : i32, i32
  }
  func.func @transform_3(%arg0: i32) -> (i32, i32) {
    %c0_i32 = arith.constant 0 : i32
    %c0_i32_0 = arith.constant 0 : i32
    %c0_i32_1 = arith.constant 0 : i32
    return %c0_i32, %c0_i32_0 : i32, i32
  }
  func.func @transform_4(%arg0: i32) -> (i32, i32) {
    %c0_i32 = arith.constant 0 : i32
    %c0_i32_0 = arith.constant 0 : i32
    %c0_i32_1 = arith.constant 0 : i32
    return %c0_i32, %c0_i32_0 : i32, i32
  }
  func.func @transform_5(%arg0: i32) -> (i32, i32) {
    %c0_i32 = arith.constant 0 : i32
    %c0_i32_0 = arith.constant 0 : i32
    %c0_i32_1 = arith.constant 0 : i32
    return %c0_i32, %c0_i32_0 : i32, i32
  }
  func.func @transform_6(%arg0: i32) -> (i32, i32) {
    %c0_i32 = arith.constant 0 : i32
    %c0_i32_0 = arith.constant 0 : i32
    %c0_i32_1 = arith.constant 0 : i32
    return %c0_i32, %c0_i32_0 : i32, i32
  }
  func.func @transform_7(%arg0: i32) -> (i32, i32) {
    %c0_i32 = arith.constant 0 : i32
    %c0_i32_0 = arith.constant 0 : i32
    %c0_i32_1 = arith.constant 0 : i32
    return %c0_i32, %c0_i32_0 : i32, i32
  }
  func.func @transform_8(%arg0: i32) -> (i32, i32) {
    %c0_i32 = arith.constant 0 : i32
    %c0_i32_0 = arith.constant 0 : i32
    %c0_i32_1 = arith.constant 0 : i32
    return %c0_i32, %c0_i32_0 : i32, i32
  }
  func.func @transform_9(%arg0: i32) -> (i32, i32) {
    %c0_i32 = arith.constant 0 : i32
    %c0_i32_0 = arith.constant 0 : i32
    %c0_i32_1 = arith.constant 0 : i32
    return %c0_i32, %c0_i32_0 : i32, i32
  }
  func.func @transform_10(%arg0: i32) -> (i32, i32) {
    %c0_i32 = arith.constant 0 : i32
    %c0_i32_0 = arith.constant 0 : i32
    %c0_i32_1 = arith.constant 0 : i32
    return %c0_i32, %c0_i32_0 : i32, i32
  }
  func.func @transform_11(%arg0: i32) -> (i32, i32) {
    %c0_i32 = arith.constant 0 : i32
    %c0_i32_0 = arith.constant 0 : i32
    %c0_i32_1 = arith.constant 0 : i32
    return %c0_i32, %c0_i32_0 : i32, i32
  }
  func.func @transform_12(%arg0: i32) -> (i32, i32) {
    %c0_i32 = arith.constant 0 : i32
    %c0_i32_0 = arith.constant 0 : i32
    %c0_i32_1 = arith.constant 0 : i32
    return %c0_i32, %c0_i32_0 : i32, i32
  }
  func.func @transform_13(%arg0: i32) -> (i32, i32) {
    %c0_i32 = arith.constant 0 : i32
    %c0_i32_0 = arith.constant 0 : i32
    %c0_i32_1 = arith.constant 0 : i32
    return %c0_i32, %c0_i32_0 : i32, i32
  }
  func.func @transform_14(%arg0: i32) -> (i32, i32) {
    %c0_i32 = arith.constant 0 : i32
    %c0_i32_0 = arith.constant 0 : i32
    %c0_i32_1 = arith.constant 0 : i32
    return %c0_i32, %c0_i32_0 : i32, i32
  }
  func.func @transform_15(%arg0: i32) -> (i32, i32) {
    %c0_i32 = arith.constant 0 : i32
    %c0_i32_0 = arith.constant 0 : i32
    %c0_i32_1 = arith.constant 0 : i32
    return %c0_i32, %c0_i32_0 : i32, i32
  }
  func.func @transform_16(%arg0: i32) -> (i32, i32) {
    %c0_i32 = arith.constant 0 : i32
    %c0_i32_0 = arith.constant 0 : i32
    return %arg0, %c0_i32 : i32, i32
  }
}

</mosaic_0001>

<bundles_post_ra>
// kernel: tpu_custom_call.1
= control target key start
LH: loop header
LB: loop body
LE: loop exit
PB: predicated region body
PF: predicated region fallthrough
CT: control target
= control target key end

     0   :  { %s3417_s0 = inlined_call_operand.vmem [shape: f32[32,16], index: 0, kind: input, shape index: {}]   ;;  %s3418_s1 = inlined_call_operand.vmem [shape: f32[32,24], index: 1, kind: input, shape index: {}]   ;;  %s3419_s2 = inlined_call_operand.vmem [shape: f32[32,24], index: 2, kind: input, shape index: {}]   ;;  %s3420_s3 = inlined_call_operand.hbm [shape: f32[16,32], index: 3, kind: input, shape index: {}]   ;;  %s3421_s4 = inlined_call_operand.vmem [shape: f32[1,32], index: 4, kind: input, shape index: {}]   ;;  %s3422_s5 = inlined_call_operand.vmem [shape: f32[24,32], index: 5, kind: input, shape index: {}]   ;;  %s3423_s6 = inlined_call_operand.vmem [shape: f32[1,32], index: 6, kind: input, shape index: {}]   ;;  %s3424_s7 = inlined_call_operand.vmem [shape: f32[24,32], index: 7, kind: input, shape index: {}]   ;;  %s3425_s8 = inlined_call_operand.hbm [shape: f32[1,32], index: 8, kind: input, shape index: {}]   ;;  %s3426_s9 = inlined_call_operand.vmem [shape: f32[24,32], index: 9, kind: input, shape index: {}]   ;;  %s3427_s10 = inlined_call_operand.vmem [shape: f32[1,32], index: 10, kind: input, shape index: {}]   ;;  %s3428_s11 = inlined_call_operand.vmem [shape: f32[24,32], index: 11, kind: input, shape index: {}]   ;;  %s3429_s12 = inlined_call_operand.vmem [shape: f32[1,32], index: 12, kind: input, shape index: {}]   ;;  %s3430_s13 = inlined_call_operand.vmem [shape: f32[16,32], index: 13, kind: input, shape index: {}]   ;;  %s3431_s14 = inlined_call_operand.vmem [shape: f32[32,32], index: 14, kind: input, shape index: {}]   ;;  %s3432_s15 = inlined_call_operand.vmem [shape: f32[1,32], index: 15, kind: input, shape index: {}]   ;;  %s3433_s16 = inlined_call_operand.hbm [shape: f32[32,32], index: 16, kind: output, shape index: {}]  }
   0x1   :  { %3435 = sst [smem:[#allocation11_spill]] %s3417_s0 }
   0x2   :  { %21 = vsyncpa [#allocation3], 0 }
   0x3   :  { %22 = vsyncpa [#allocation6], 0 }
   0x4   :  { %23 = vsyncpa [#allocation4], 0  ;;  %s2811_s21 = smov [#allocation2]   ;;  %s2739_s25 = scalar_lea.hbm %s3420_s3, 256 }
   0x5   :  { %s35_s22 = sshll.u32 %s2811_s21, 4  ;;  %p2740_p0 = scmp.ne.s32.totalorder %s3420_s3, %s2739_s25  ;;  %s36_s22 = int_to_ptr.vmem [resolvable:$true] %s35_s22 }
   0x6   :  { %p2743_p1 = scmp.lt.u32.totalorder %s2739_s25, %s3420_s3 }
   0x8   :  { %p2745_p2 = pnand %p2743_p1, %p2740_p0 }
   0xa   :  { %2748 = shalt.err (!%p2745_p2)
}
   0xb   :  { %s2749_s30 = scalar_lea.vmem %s36_s22, 256  ;;  %p2754_p4 = scmp.lt.s32.totalorder %s36_s22, %s36_s22 }
   0xc   :  { %p2750_p3 = scmp.ne.s32.totalorder %s36_s22, %s2749_s30  ;;  %p2755_p5 = scmp.lt.s32.totalorder %s2749_s30, %s2749_s30 }
   0xe   :  { %p2756_p6 = por %p2755_p5, %p2754_p4 }
  0x10   :  { %p2757_p7 = pnand %p2756_p6, %p2750_p3 }
  0x12   :  { %2760 = shalt.err (!%p2757_p7)
}
  0x13   :  { %s2812_s0 = smov 128   ;;  %s2813_s17 = smov 8  }
  0x14   :  { %41 = dma.hbm_to_vmem [thread:$0]  %s3420_s3, 256, %s36_s22, [#allocation3], %s2812_s0, %s2812_s0, %s2813_s17  }
  0x15   :  { %s2814_s20 = smov [#allocation5]   ;;  %s2761_s25 = scalar_lea.hbm %s3425_s8, 16 }
  0x16   :  { %s56_s21 = sshll.u32 %s2814_s20, 4  ;;  %p2762_p8 = scmp.ne.s32.totalorder %s3425_s8, %s2761_s25  ;;  %s57_s21 = int_to_ptr.vmem [resolvable:$true] %s56_s21 }
  0x17   :  { %p2765_p9 = scmp.lt.u32.totalorder %s2761_s25, %s3425_s8 }
  0x19   :  { %p2767_p10 = pnand %p2765_p9, %p2762_p8 }
  0x1b   :  { %2770 = shalt.err (!%p2767_p10)
}
  0x1c   :  { %s2771_s30 = scalar_lea.vmem %s57_s21, 16  ;;  %s2775_s3 = scalar_lea.vmem %s57_s21, 32 }
  0x1d   :  { %p2772_p11 = scmp.ne.s32.totalorder %s57_s21, %s2771_s30  ;;  %p2776_p12 = scmp.lt.s32.totalorder %s57_s21, %s57_s21 }
  0x1e   :  { %p2777_p13 = scmp.lt.s32.totalorder %s2775_s3, %s2771_s30 }
  0x20   :  { %p2778_p0 = por %p2777_p13, %p2776_p12 }
  0x22   :  { %p2779_p1 = pnand %p2778_p0, %p2772_p11 }
  0x24   :  { %2782 = shalt.err (!%p2779_p1)
}
  0x25   :  { %59 = dma.hbm_to_vmem [thread:$0]  %s3425_s8, 16, %s57_s21, [#allocation6]  }
  0x26   :  { %2805 = dma.done.wait [#allocation3], 256  }
  0x27   :  { %2806 = vsyncadd [#allocation3], 4294967040 }
  0x28   :  { %2807 = dma.done.wait [#allocation6], 16  }
  0x29   :  { %2808 = vsyncadd [#allocation6], 4294967280  ;;  %vm101_vm0 = vcmask 130048   ;;  %v92_v0 = vld [vmem:[#allocation2] sm:$0xff]  ;;  %v93_v1 = vld [vmem:[#allocation2 + $0x8] sm:$0xff]  ;;  %s3436_s23 = sld [smem:[#allocation11_spill]]  ;;  %v604_v37 = vlaneseq }
  0x2a   :  { %v2435_v3 = vpack.c.bf16 %v93_v1, %v92_v0  ;;  %v199_v4 = vld [vmem:[%s3422_s5] sm:$0xff]  ;;  %v200_v5 = vld [vmem:[%s3422_s5 + $0x8] sm:$0xff]  ;;  %vm209_vm1 = vcmask 195584   ;;  %v201_v10 = vld [vmem:[%s3422_s5 + $0x10] sm:$0xff]  ;;  %v2815_v31 = vmov 0.0|0.0   ;;  %vm2816_vm2 = vmmov 0  }
  0x2b   :  { %v2439_v6 = vpack.c.bf16 %v200_v5, %v199_v4  ;;  %v84_v7 = vld [vmem:[%s3418_s1] sm:$0xff]  ;;  %v308_v12 = vld [vmem:[%s3424_s7 + $0x8] sm:$0xff]  ;;  %v86_v16 = vld [vmem:[%s3418_s1 + $0x10] sm:$0xff]  ;;  %v2817_v32 = vmov 0.0   ;;  %v605_v40 = vshrl.u32 %v604_v37, 7  ;;  %vm1052_vm3 = vcmask 261120  }
  0x2c   :  { %2436 = vmatprep.subr.bf16.mxu0 %v2435_v3  ;;  %2241 = vmatprep.mubr.msk.f32.mxu1 %vm209_vm1, %v84_v7  ;;  %v307_v11 = vld [vmem:[%s3424_s7] sm:$0xff]  ;;  %v85_v15 = vld [vmem:[%s3418_s1 + $0x8] sm:$0xff]  ;;  %v309_v17 = vld [vmem:[%s3424_s7 + $0x10] sm:$0xff]  ;;  %vm1445_vm5 = vcmask 523264  }
  0x2d   :  { %2438 = vmatpush3.bf16.msra.mxu0 %v2435_v3  ;;  %v2443_v14 = vpack.c.bf16 %v308_v12, %v307_v11  ;;  %v87_v18 = vld [vmem:[%s3418_s1 + $0x18] sm:$0xff]  ;;  %v88_v19 = vld [vmem:[%s3419_s2] sm:$0xff]  ;;  %v89_v20 = vld [vmem:[%s3419_s2 + $0x8] sm:$0xff]  ;;  %v3040_v45 = vsub.s32 0, %v605_v40  ;;  %v3042_v46 = vsub.s32 1, %v605_v40  ;;  %v3044_v47 = vsub.s32 2, %v605_v40 }
  0x2e   :  { %2440 = vmatprep.subr.bf16.mxu0 %v2439_v6  ;;  %v90_v21 = vld [vmem:[%s3419_s2 + $0x10] sm:$0xff]  ;;  %v91_v22 = vld [vmem:[%s3419_s2 + $0x18] sm:$0xff]  ;;  %v509_v23 = vld [vmem:[%s3428_s11] sm:$0xff]  ;;  %v3046_v48 = vsub.s32 3, %v605_v40  ;;  %v3048_v50 = vsub.s32 4, %v605_v40  ;;  %v3050_v51 = vsub.s32 5, %v605_v40 }
  0x2f   :  { %v80_v2 = vld [vmem:[%s3436_s23] sm:$0xff]  ;;  %v81_v8 = vld [vmem:[%s3436_s23 + $0x8] sm:$0xff]  ;;  %v82_v9 = vld [vmem:[%s3436_s23 + $0x10] sm:$0xff]  ;;  %v3052_v55 = vsub.s32 6, %v605_v40  ;;  %v3054_v56 = vsub.s32 7, %v605_v40 }
  0x30   :  { %2205 = vmatprep.mubr.msk.f32.mxu0 %vm101_vm0, %v80_v2  ;;  %v83_v13 = vld [vmem:[%s3436_s23 + $0x18] sm:$0xff]  ;;  %v510_v24 = vld [vmem:[%s3428_s11 + $0x8] sm:$0xff]  ;;  %v414_v26 = vld [vmem:[%s3426_s9] sm:$0xff] }
  0x31   :  { %2206 = vmatmul.mubr.msk.f32.vlgmr.msra.gmra.mrb[0].mxu0 %vm101_vm0, %v81_v8  ;;  %v2451_v25 = vpack.c.bf16 %v510_v24, %v509_v23  ;;  %v415_v27 = vld [vmem:[%s3426_s9 + $0x8] sm:$0xff]  ;;  %v511_v29 = vld [vmem:[%s3428_s11 + $0x10] sm:$0xff]  ;;  %v2012_v43 = vld [vmem:[%s3423_s6] ss:$0 sm:$0xff] }
  0x32   :  { %2442 = vmatpush3.bf16.msra.mxu0 %v2439_v6  ;;  %2208 = vmatprep.mubr.msk.f32.mxu0 %vm101_vm0, %v82_v9  ;;  %v2447_v28 = vpack.c.bf16 %v415_v27, %v414_v26  ;;  %v416_v30 = vld [vmem:[%s3426_s9 + $0x10] sm:$0xff]  ;;  %v2017_v44 = vld [vmem:[#allocation5] ss:$0 sm:$0xff]  ;;  %vm3113_vm4 = vmpackc.low %vm1052_vm3, %vm1052_vm3 }
  0x33   :  { %2215 = vmatprep.subr.mxu0 %v201_v10 }
  0x34   :  { %2448 = vmatprep.subr.bf16.mxu1 %v2447_v28 }
  0x35   :  { %2209 = vmatmul.mubr.msk.f32.gmra.mrb[2].mxu0 %vm101_vm0, %v83_v13  ;;  %2450 = vmatpush3.bf16.msra.mxu1 %v2447_v28 }
  0x36   :  { %2216 = vmatpush3.msra.mxu0 %v201_v10  ;;  %2217 = vmatprep.mubr.msk.f32.mxu0 %vm209_vm1, %v84_v7 }
  0x37   :  { %2444 = vmatprep.subr.bf16.mxu0 %v2443_v14  ;;  %2239 = vmatprep.subr.mxu1 %v416_v30 }
  0x39   :  { %2218 = vmatmul.mubr.msk.f32.vlgmr.msra.gmra.mrb[4].mxu0 %vm209_vm1, %v85_v15  ;;  %2240 = vmatpush3.msra.mxu1 %v416_v30 }
  0x3a   :  { %2446 = vmatpush3.bf16.msra.mxu0 %v2443_v14  ;;  %2220 = vmatprep.mubr.msk.f32.mxu0 %vm209_vm1, %v86_v16 }
  0x3b   :  { %2227 = vmatprep.subr.mxu0 %v309_v17  ;;  %2242 = vmatmul.mubr.msk.f32.vlgmr.msra.gmra.mrb[0].mxu1 %vm209_vm1, %v85_v15 }
  0x3c   :  { %2455 = vmatprep.subr.bf16.mxu1 %v2815_v31  ;;  %2244 = vmatprep.mubr.msk.f32.mxu1 %vm209_vm1, %v86_v16 }
  0x3d   :  { %2221 = vmatmul.mubr.msk.f32.gmra.mrb[6].mxu0 %vm209_vm1, %v87_v18 }
  0x3e   :  { %2228 = vmatpush3.msra.mxu0 %v309_v17  ;;  %2229 = vmatprep.mubr.msk.f32.mxu0 %vm209_vm1, %v88_v19 }
  0x3f   :  { %2452 = vmatprep.subr.bf16.mxu0 %v2451_v25  ;;  %2245 = vmatmul.mubr.msk.f32.gmra.mrb[2].mxu1 %vm209_vm1, %v87_v18 }
  0x40   :  { %2275 = vmatprep.mubr.msk.f32.mxu1 %vm2816_vm2, %v2817_v32 }
  0x41   :  { %2230 = vmatmul.mubr.msk.f32.vlgmr.msra.gmra.mrb[8].mxu0 %vm209_vm1, %v89_v20 }
  0x42   :  { %2232 = vmatprep.mubr.msk.f32.mxu0 %vm209_vm1, %v90_v21  ;;  %2454 = vmatpush3.bf16.msra.mxu0 %v2451_v25 }
  0x43   :  { %2251 = vmatprep.subr.mxu0 %v511_v29 }
  0x45   :  { %2233 = vmatmul.mubr.msk.f32.gmra.mrb[10].mxu0 %vm209_vm1, %v91_v22 }
  0x46   :  { %2253 = vmatprep.mubr.msk.f32.mxu0 %vm209_vm1, %v88_v19  ;;  %2252 = vmatpush3.msra.mxu0 %v511_v29 }
  0x47   :  { %2471 = vmatprep.subr.bf16.mxu0 %v2815_v31 }
  0x49   :  { %2254 = vmatmul.mubr.msk.f32.vlgmr.msra.gmra.mrb[12].mxu0 %vm209_vm1, %v89_v20 }
  0x4a   :  { %2256 = vmatprep.mubr.msk.f32.mxu0 %vm209_vm1, %v90_v21 }
  0x4d   :  { %2257 = vmatmul.mubr.msk.f32.gmra.mrb[14].mxu0 %vm209_vm1, %v91_v22 }
  0x4e   :  { %2294 = vmatprep.mubr.msk.f32.mxu0 %vm2816_vm2, %v2817_v32 }
 0x104   :  { %v3029_v33 = vpop.f32.mrb[0].mxu0 }
 0x105   :  { %v3031_v34 = vpop.f32.mrb[1].mxu0 }
 0x108   :  { %v3033_v35 = vpop.f32.mrb[2].mxu0 }
 0x109   :  { %v3035_v36 = vpop.f32.mrb[3].mxu0 }
 0x10c   :  { %v2219_v38 = vpop.f32.mrb[4].mxu0 }
 0x10d   :  { %v288_v39 = vpop.f32.mrb[5].mxu0  ;;  %v294_v52 = vadd.f32 %v2219_v38, %v2012_v43 }
 0x10e   :  { %v3056_v57 = vadd.f32 %v2012_v43, %v288_v39 }
 0x110   :  { %v2222_v41 = vpop.f32.mrb[6].mxu0 }
 0x111   :  { %v298_v42 = vpop.f32.mrb[7].mxu0  ;;  %v3058_v58 = vadd.f32 %v2222_v41, %v2012_v43 }
 0x112   :  { %v3060_v59 = vadd.f32 %v2012_v43, %v298_v42 }
 0x114   :  { %v2231_v49 = vpop.f32.mrb[8].mxu0 }
 0x115   :  { %v401_v53 = vadd.f32 %v2231_v49, %v2017_v44  ;;  %v395_v54 = vpop.f32.mrb[9].mxu0 }
 0x116   :  { %v3062_v60 = vadd.f32 %v2017_v44, %v395_v54 }
 0x117   :  { %v611_v61 = vrot.slane %v401_v53, %v3040_v45  ;;  %v667_v62 = vrot.slane %v401_v53, %v3042_v46  ;;  %v723_v63 = vrot.slane %v401_v53, %v3044_v47  ;;  %v779_v0 = vrot.slane %v401_v53, %v3046_v48 }
 0x118   :  { %v2234_v1 = vpop.f32.mrb[10].mxu0  ;;  %v607_v2 = vrot.slane %v3062_v60, %v3040_v45  ;;  %v663_v3 = vrot.slane %v3062_v60, %v3042_v46  ;;  %v719_v4 = vrot.slane %v3062_v60, %v3044_v47  ;;  %v775_v5 = vrot.slane %v3062_v60, %v3046_v48 }
 0x119   :  { %v3076_v6 = vadd.f32 %v2234_v1, %v2017_v44  ;;  %v405_v7 = vpop.f32.mrb[11].mxu0  ;;  %v621_v8 = vadd.f32 %v611_v61, %v294_v52  ;;  %v677_v9 = vadd.f32 %v667_v62, %v294_v52  ;;  %v733_v10 = vadd.f32 %v723_v63, %v294_v52 }
 0x11a   :  { %v3078_v11 = vadd.f32 %v2017_v44, %v405_v7  ;;  %v620_v12 = vadd.f32 %v607_v2, %v3056_v57  ;;  %v676_v13 = vadd.f32 %v663_v3, %v3056_v57  ;;  %v789_v14 = vadd.f32 %v779_v0, %v294_v52 }
 0x11b   :  { %v625_v15 = vmul.f32 0.5, %v621_v8  ;;  %v681_v16 = vmul.f32 0.5, %v677_v9  ;;  %v737_v17 = vmul.f32 0.5, %v733_v10  ;;  %v732_v18 = vadd.f32 %v719_v4, %v3056_v57 }
 0x11c   :  { %v624_v19 = vmul.f32 0.5, %v620_v12  ;;  %v680_v20 = vmul.f32 0.5, %v676_v13  ;;  %v793_v21 = vmul.f32 0.5, %v789_v14  ;;  %v788_v22 = vadd.f32 %v775_v5, %v3056_v57 }
 0x11d   :  { %2591 = vtanh.f32 %v625_v15  ;;  %v736_v23 = vmul.f32 0.5, %v732_v18  ;;  %v835_v24 = vrot.slane %v401_v53, %v3048_v50  ;;  %v891_v25 = vrot.slane %v401_v53, %v3050_v51 }
 0x11e   :  { %2593 = vtanh.f32 %v681_v16  ;;  %v792_v26 = vmul.f32 0.5, %v788_v22  ;;  %v831_v27 = vrot.slane %v3062_v60, %v3048_v50  ;;  %v887_v28 = vrot.slane %v3062_v60, %v3050_v51 }
 0x11f   :  { %2595 = vtanh.f32 %v624_v19  ;;  %v845_v29 = vadd.f32 %v835_v24, %v294_v52  ;;  %v901_v30 = vadd.f32 %v891_v25, %v294_v52  ;;  %v947_v37 = vrot.slane %v401_v53, %v3052_v55 }
 0x120   :  { %2597 = vtanh.f32 %v680_v20  ;;  %v844_v38 = vadd.f32 %v831_v27, %v3056_v57  ;;  %v900_v39 = vadd.f32 %v887_v28, %v3056_v57  ;;  %v1003_v40 = vrot.slane %v401_v53, %v3054_v56 }
 0x121   :  { %2599 = vtanh.f32 %v737_v17  ;;  %v849_v41 = vmul.f32 0.5, %v845_v29  ;;  %v905_v42 = vmul.f32 0.5, %v901_v30  ;;  %v957_v43 = vadd.f32 %v947_v37, %v294_v52 }
 0x122   :  { %2601 = vtanh.f32 %v793_v21  ;;  %v848_v44 = vmul.f32 0.5, %v844_v38  ;;  %v904_v49 = vmul.f32 0.5, %v900_v39  ;;  %v1013_v54 = vadd.f32 %v1003_v40, %v294_v52 }
 0x123   :  { %2603 = vtanh.f32 %v736_v23  ;;  %v961_v61 = vmul.f32 0.5, %v957_v43  ;;  %v943_v62 = vrot.slane %v3062_v60, %v3052_v55  ;;  %v999_v63 = vrot.slane %v3062_v60, %v3054_v56 }
 0x124   :  { %2605 = vtanh.f32 %v792_v26  ;;  %v1017_v0 = vmul.f32 0.5, %v1013_v54  ;;  %v619_v53 = vrot.slane %v3076_v6, %v3040_v45  ;;  %v675_v1 = vrot.slane %v3076_v6, %v3042_v46 }
 0x125   :  { %2607 = vtanh.f32 %v849_v41  ;;  %v956_v2 = vadd.f32 %v943_v62, %v3056_v57  ;;  %v1012_v52 = vadd.f32 %v999_v63, %v3056_v57  ;;  %v615_v3 = vrot.slane %v3078_v11, %v3040_v45  ;;  %v2255_v57 = vpop.f32.mrb[12].mxu0 }
 0x126   :  { %2609 = vtanh.f32 %v905_v42  ;;  %v623_v4 = vadd.f32 %v619_v53, %v3058_v58  ;;  %v679_v60 = vadd.f32 %v675_v1, %v3058_v58  ;;  %v671_v5 = vrot.slane %v3078_v11, %v3042_v46 }
 0x127   :  { %v2592_v7 = vpop.eup %2591  ;;  %2611 = vtanh.f32 %v848_v44  ;;  %v960_v8 = vmul.f32 0.5, %v956_v2  ;;  %v1016_v9 = vmul.f32 0.5, %v1012_v52  ;;  %v622_v10 = vadd.f32 %v615_v3, %v3060_v59 }
 0x128   :  { %v2594_v12 = vpop.eup %2593  ;;  %2613 = vtanh.f32 %v904_v49  ;;  %v627_v13 = vmul.f32 0.5, %v623_v4  ;;  %v683_v14 = vmul.f32 0.5, %v679_v60  ;;  %v678_v15 = vadd.f32 %v671_v5, %v3060_v59 }
 0x129   :  { %v2596_v16 = vpop.eup %2595  ;;  %v2472_v17 = vpack.c.bf16 %v2594_v12, %v2592_v7  ;;  %2615 = vtanh.f32 %v961_v61  ;;  %v626_v18 = vmul.f32 0.5, %v622_v10  ;;  %v731_v19 = vrot.slane %v3076_v6, %v3044_v47 }
 0x12a   :  { %v2598_v20 = vpop.eup %2597  ;;  %2617 = vtanh.f32 %v1017_v0  ;;  %v682_v21 = vmul.f32 0.5, %v678_v15  ;;  %v787_v22 = vrot.slane %v3076_v6, %v3046_v48  ;;  %v727_v23 = vrot.slane %v3078_v11, %v3044_v47 }
 0x12b   :  { %v2600_v24 = vpop.eup %2599  ;;  %2474 = vmatpush3.bf16.xpose.msk.msra.mxu0 %vm3113_vm4, %v2472_v17  ;;  %v2456_v25 = vpack.c.bf16 %v2598_v20, %v2596_v16  ;;  %2619 = vtanh.f32 %v960_v8  ;;  %v735_v26 = vadd.f32 %v731_v19, %v3058_v58  ;;  %v783_v27 = vrot.slane %v3078_v11, %v3046_v48 }
 0x12c   :  { %v2602_v28 = vpop.eup %2601  ;;  %2475 = vmatprep.subr.bf16.mxu0 %v2815_v31  ;;  %2621 = vtanh.f32 %v1016_v9  ;;  %v791_v29 = vadd.f32 %v787_v22, %v3058_v58  ;;  %v734_v30 = vadd.f32 %v727_v23, %v3060_v59  ;;  %v843_v37 = vrot.slane %v3076_v6, %v3048_v50 }
 0x12d   :  { %v2604_v38 = vpop.eup %2603  ;;  %2458 = vmatpush3.bf16.xpose.msk.msra.mxu1 %vm3113_vm4, %v2456_v25  ;;  %v2476_v39 = vpack.c.bf16 %v2602_v28, %v2600_v24  ;;  %2623 = vtanh.f32 %v627_v13  ;;  %v739_v40 = vmul.f32 0.5, %v735_v26  ;;  %v790_v41 = vadd.f32 %v783_v27, %v3060_v59 }
 0x12e   :  { %v2606_v42 = vpop.eup %2605  ;;  %2459 = vmatprep.subr.bf16.mxu1 %v2815_v31  ;;  %2625 = vtanh.f32 %v683_v14  ;;  %v795_v43 = vmul.f32 0.5, %v791_v29  ;;  %v738_v44 = vmul.f32 0.5, %v734_v30  ;;  %v847_v49 = vadd.f32 %v843_v37, %v3058_v58 }
 0x12f   :  { %v2608_v54 = vpop.eup %2607  ;;  %v2460_v61 = vpack.c.bf16 %v2606_v42, %v2604_v38  ;;  %2627 = vtanh.f32 %v626_v18  ;;  %v794_v62 = vmul.f32 0.5, %v790_v41  ;;  %v899_v63 = vrot.slane %v3076_v6, %v3050_v51 }
 0x130   :  { %v2610_v0 = vpop.eup %2609  ;;  %2629 = vtanh.f32 %v682_v21  ;;  %v851_v53 = vmul.f32 0.5, %v847_v49  ;;  %v839_v1 = vrot.slane %v3078_v11, %v3048_v50  ;;  %v895_v2 = vrot.slane %v3078_v11, %v3050_v51 }
 0x131   :  { %v2612_v52 = vpop.eup %2611  ;;  %v2480_v3 = vpack.c.bf16 %v2610_v0, %v2608_v54  ;;  %2631 = vtanh.f32 %v739_v40  ;;  %v903_v4 = vadd.f32 %v899_v63, %v3058_v58  ;;  %v955_v60 = vrot.slane %v3076_v6, %v3052_v55 }
 0x132   :  { %v2614_v5 = vpop.eup %2613  ;;  %2633 = vtanh.f32 %v795_v43  ;;  %v846_v7 = vadd.f32 %v839_v1, %v3060_v59  ;;  %v902_v8 = vadd.f32 %v895_v2, %v3060_v59  ;;  %v1011_v9 = vrot.slane %v3076_v6, %v3054_v56 }
 0x133   :  { %v2616_v10 = vpop.eup %2615  ;;  %2478 = vmatpush3.bf16.xpose.msk.msra.mxu0 %vm3113_vm4, %v2476_v39  ;;  %v2464_v12 = vpack.c.bf16 %v2614_v5, %v2612_v52  ;;  %2635 = vtanh.f32 %v738_v44  ;;  %v907_v13 = vmul.f32 0.5, %v903_v4  ;;  %v959_v14 = vadd.f32 %v955_v60, %v3058_v58  ;;  %v2007_v52 = vld [vmem:[%s3421_s4] ss:$0 sm:$0xff]  ;;  %s2818_s4 = smov [#allocation7]  }
 0x134   :  { %v2618_v15 = vpop.eup %2617  ;;  %2479 = vmatprep.subr.bf16.mxu0 %v2815_v31  ;;  %2637 = vtanh.f32 %v794_v62  ;;  %v850_v16 = vmul.f32 0.5, %v846_v7  ;;  %v906_v17 = vmul.f32 0.5, %v902_v8  ;;  %v1015_v18 = vadd.f32 %v1011_v9, %v3058_v58  ;;  %v3222_v8 = vld [vmem:[%s3429_s12] ss:$0 sm:$0xff]  ;;  %v585_v9 = vpop.f32.mrb[13].mxu0  ;;  %s1994_s20 = sshll.u32 %s2818_s4, 4  ;;  %s1995_s20 = int_to_ptr.vmem [resolvable:$true] %s1994_s20 }
 0x135   :  { %v2620_v19 = vpop.eup %2619  ;;  %2462 = vmatpush3.bf16.xpose.msk.msra.mxu1 %vm3113_vm4, %v2460_v61  ;;  %v2484_v6 = vpack.c.bf16 %v2618_v15, %v2616_v10  ;;  %2639 = vtanh.f32 %v851_v53  ;;  %v963_v20 = vmul.f32 0.5, %v959_v14  ;;  %v951_v21 = vrot.slane %v3078_v11, %v3052_v55  ;;  %p2788_p3 = scmp.lt.s32.totalorder %s1995_s20, %s1995_s20 }
 0x136   :  { %v2622_v22 = vpop.eup %2621  ;;  %2463 = vmatprep.subr.bf16.mxu1 %v2815_v31  ;;  %2641 = vtanh.f32 %v907_v13  ;;  %v1019_v23 = vmul.f32 0.5, %v1015_v18  ;;  %v1007_v24 = vrot.slane %v3078_v11, %v3054_v56  ;;  %v186_v5 = vadd.f32 %v3029_v33, %v2007_v52 }
 0x137   :  { %v2624_v25 = vpop.eup %2623  ;;  %v2468_v58 = vpack.c.bf16 %v2622_v22, %v2620_v19  ;;  %2643 = vtanh.f32 %v850_v16  ;;  %v958_v26 = vadd.f32 %v951_v21, %v3060_v59  ;;  %v181_v7 = vadd.f32 %v2007_v52, %v3031_v34  ;;  %v2258_v21 = vpop.f32.mrb[14].mxu0 }
 0x138   :  { %v2626_v27 = vpop.eup %2625  ;;  %2645 = vtanh.f32 %v906_v17  ;;  %v1014_v28 = vadd.f32 %v1007_v24, %v3060_v59  ;;  %v196_v33 = vadd.f32 %v3033_v35, %v2007_v52  ;;  %v191_v34 = vadd.f32 %v2007_v52, %v3035_v36  ;;  %v3229_v35 = vld [vmem:[%s3427_s10] ss:$0 sm:$0xff] }
 0x139   :  { %v2628_v29 = vpop.eup %2627  ;;  %v2504_v30 = vpack.c.bf16 %v2626_v27, %v2624_v25  ;;  %2647 = vtanh.f32 %v963_v20  ;;  %v962_v37 = vmul.f32 0.5, %v958_v26  ;;  %v3232_v36 = vadd.f32 %v2255_v57, %v3222_v8 }
 0x13a   :  { %v2630_v38 = vpop.eup %2629  ;;  %2649 = vtanh.f32 %v1019_v23  ;;  %v1018_v39 = vmul.f32 0.5, %v1014_v28  ;;  %v586_v10 = vadd.f32 %v3222_v8, %v585_v9 }
 0x13b   :  { %v2632_v40 = vpop.eup %2631  ;;  %2482 = vmatpush3.bf16.xpose.msk.msra.mxu0 %vm3113_vm4, %v2480_v3  ;;  %v2488_v11 = vpack.c.bf16 %v2630_v38, %v2628_v29  ;;  %2651 = vtanh.f32 %v962_v37  ;;  %v639_v15 = vrot.slane %v3232_v36, %v3040_v45  ;;  %v695_v16 = vrot.slane %v3232_v36, %v3042_v46 }
 0x13c   :  { %v2634_v41 = vpop.eup %2633  ;;  %2483 = vmatprep.subr.bf16.mxu0 %v2815_v31  ;;  %2653 = vtanh.f32 %v1018_v39  ;;  %v751_v17 = vrot.slane %v3232_v36, %v3044_v47  ;;  %v635_v19 = vrot.slane %v586_v10, %v3040_v45  ;;  %v747_v20 = vrot.slane %v586_v10, %v3044_v47 }
 0x13d   :  { %v2636_v42 = vpop.eup %2635  ;;  %2466 = vmatpush3.bf16.xpose.msk.msra.mxu1 %vm3113_vm4, %v2464_v12  ;;  %v2508_v59 = vpack.c.bf16 %v2634_v41, %v2632_v40  ;;  %v2243_v12 = vpop.f32.mrb[0].mxu1  ;;  %v803_v24 = vrot.slane %v586_v10, %v3046_v48  ;;  %v807_v29 = vrot.slane %v3232_v36, %v3046_v48  ;;  %v975_v57 = vrot.slane %v3232_v36, %v3052_v55 }
 0x13e   :  { %v2638_v43 = vpop.eup %2637  ;;  %2467 = vmatprep.subr.bf16.mxu1 %v2815_v31  ;;  %v496_v13 = vadd.f32 %v2243_v12, %v3229_v35  ;;  %v490_v14 = vpop.f32.mrb[1].mxu1  ;;  %v1031_v9 = vrot.slane %v3232_v36, %v3054_v56 }
 0x13f   :  { %v2640_v44 = vpop.eup %2639  ;;  %v2492_v49 = vpack.c.bf16 %v2638_v43, %v2636_v42  ;;  %v491_v18 = vadd.f32 %v3229_v35, %v490_v14  ;;  %v3262_v14 = vadd.f32 %v2258_v21, %v3222_v8 }
 0x140   :  { %v2642_v54 = vpop.eup %2641  ;;  %v649_v22 = vadd.f32 %v639_v15, %v496_v13  ;;  %v705_v23 = vadd.f32 %v695_v16, %v496_v13  ;;  %v761_v25 = vadd.f32 %v751_v17, %v496_v13  ;;  %v817_v43 = vadd.f32 %v807_v29, %v496_v13 }
 0x141   :  { %v2644_v61 = vpop.eup %2643  ;;  %v2512_v62 = vpack.c.bf16 %v2642_v54, %v2640_v44  ;;  %v648_v26 = vadd.f32 %v635_v19, %v491_v18  ;;  %v760_v28 = vadd.f32 %v747_v20, %v491_v18  ;;  %v816_v39 = vadd.f32 %v803_v24, %v491_v18 }
 0x142   :  { %v2646_v63 = vpop.eup %2645  ;;  %v653_v37 = vmul.f32 0.5, %v649_v22  ;;  %v709_v38 = vmul.f32 0.5, %v705_v23  ;;  %v765_v40 = vmul.f32 0.5, %v761_v25  ;;  %v915_v54 = vrot.slane %v586_v10, %v3050_v51 }
 0x143   :  { %v2648_v0 = vpop.eup %2647  ;;  %2486 = vmatpush3.bf16.xpose.msk.msra.mxu0 %vm3113_vm4, %v2484_v6  ;;  %v2496_v53 = vpack.c.bf16 %v2646_v63, %v2644_v61  ;;  %v691_v6 = vrot.slane %v586_v10, %v3042_v46  ;;  %v652_v41 = vmul.f32 0.5, %v648_v26  ;;  %v820_v44 = vmul.f32 0.5, %v816_v39 }
 0x144   :  { %v2650_v1 = vpop.eup %2649  ;;  %2503 = vmatprep.subr.bf16.mxu0 %v2815_v31  ;;  %2655 = vtanh.f32 %v653_v37  ;;  %v821_v61 = vmul.f32 0.5, %v817_v43  ;;  %v919_v63 = vrot.slane %v3232_v36, %v3050_v51  ;;  %v985_v15 = vadd.f32 %v975_v57, %v496_v13 }
 0x145   :  { %v2652_v2 = vpop.eup %2651  ;;  %2470 = vmatpush3.bf16.xpose.msk.msra.mxu1 %vm3113_vm4, %v2468_v58  ;;  %v2516_v3 = vpack.c.bf16 %v2650_v1, %v2648_v0  ;;  %v595_v58 = vpop.f32.mrb[15].mxu0  ;;  %v704_v27 = vadd.f32 %v691_v6, %v491_v18  ;;  %2657 = vtanh.f32 %v652_v41  ;;  %v971_v1 = vrot.slane %v586_v10, %v3052_v55 }
 0x146   :  { %v2654_v4 = vpop.eup %2653  ;;  %2487 = vmatprep.subr.bf16.mxu1 %v2815_v31  ;;  %v929_v52 = vadd.f32 %v919_v63, %v496_v13  ;;  %v1041_v16 = vadd.f32 %v1031_v9, %v496_v13  ;;  %v989_v6 = vmul.f32 0.5, %v985_v15  ;;  %v703_v63 = vrot.slane %v3262_v14, %v3042_v46 }
 0x147   :  { %v2500_v60 = vpack.c.bf16 %v2654_v4, %v2652_v2  ;;  %v708_v42 = vmul.f32 0.5, %v704_v27 }
 0x148   :  { %v1045_v21 = vmul.f32 0.5, %v1041_v16  ;;  %v759_v16 = vrot.slane %v3262_v14, %v3044_v47 }
 0x149   :  { %2659 = vtanh.f32 %v708_v42 }
 0x14a   :  { %2295 = vmatmul.mubr.msk.f32.vlgmr.msra.gmra.mrb[16].mxu0 %vm1052_vm3, %v186_v5  ;;  %2661 = vtanh.f32 %v709_v38 }
 0x14b   :  { %2506 = vmatpush3.bf16.xpose.msk.msra.mxu0 %vm3113_vm4, %v2504_v30  ;;  %2332 = vmatprep.mubr.msk.f32.mxu0 %vm2816_vm2, %v2817_v32  ;;  %v2246_v30 = vpop.f32.mrb[2].mxu1 }
 0x14c   :  { %2276 = vmatmul.mubr.msk.f32.vlgmr.msra.gmra.mrb[4].mxu1 %vm1052_vm3, %v181_v7  ;;  %2507 = vmatprep.subr.bf16.mxu0 %v2815_v31  ;;  %v3268_v17 = vadd.f32 %v2246_v30, %v3229_v35 }
 0x14d   :  { %2490 = vmatpush3.bf16.xpose.msk.msra.mxu1 %vm3113_vm4, %v2488_v11  ;;  %2313 = vmatprep.mubr.msk.f32.mxu1 %vm2816_vm2, %v2817_v32  ;;  %v500_v11 = vpop.f32.mrb[3].mxu1 }
 0x14e   :  { %2491 = vmatprep.subr.bf16.mxu1 %v2815_v31  ;;  %v3271_v19 = vadd.f32 %v3229_v35, %v500_v11 }
 0x153   :  { %2510 = vmatpush3.bf16.xpose.msk.msra.mxu0 %vm3113_vm4, %v2508_v59  ;;  %v764_v59 = vmul.f32 0.5, %v760_v28 }
 0x154   :  { %2511 = vmatprep.subr.bf16.mxu0 %v2815_v31 }
 0x155   :  { %2494 = vmatpush3.bf16.xpose.msk.msra.mxu1 %vm3113_vm4, %v2492_v49  ;;  %v859_v49 = vrot.slane %v586_v10, %v3048_v50  ;;  %2663 = vtanh.f32 %v764_v59 }
 0x156   :  { %2495 = vmatprep.subr.bf16.mxu1 %v2815_v31  ;;  %2665 = vtanh.f32 %v820_v44 }
 0x157   :  { %v872_v0 = vadd.f32 %v859_v49, %v491_v18  ;;  %2667 = vtanh.f32 %v765_v40 }
 0x158   :  { %2669 = vtanh.f32 %v821_v61 }
 0x159   :  { %v876_v4 = vmul.f32 0.5, %v872_v0 }
 0x15b   :  { %2514 = vmatpush3.bf16.xpose.msk.msra.mxu0 %vm3113_vm4, %v2512_v62  ;;  %v863_v62 = vrot.slane %v3232_v36, %v3048_v50  ;;  %2671 = vtanh.f32 %v876_v4  ;;  %v2656_v36 = vpop.eup %2655 }
 0x15c   :  { %2515 = vmatprep.subr.bf16.mxu0 %v2815_v31  ;;  %v2658_v20 = vpop.eup %2657 }
 0x15d   :  { %2498 = vmatpush3.bf16.xpose.msk.msra.mxu1 %vm3113_vm4, %v2496_v53  ;;  %v928_v53 = vadd.f32 %v915_v54, %v491_v18  ;;  %v873_v2 = vadd.f32 %v863_v62, %v496_v13  ;;  %v2660_v22 = vpop.eup %2659  ;;  %v647_v62 = vrot.slane %v3262_v14, %v3040_v45 }
 0x15e   :  { %2499 = vmatprep.subr.bf16.mxu1 %v2815_v31  ;;  %v2520_v23 = vpack.c.bf16 %v2660_v22, %v2658_v20  ;;  %v871_v20 = vrot.slane %v3262_v14, %v3048_v50  ;;  %v763_v22 = vadd.f32 %v759_v16, %v3268_v17 }
 0x15f   :  { %v932_v5 = vmul.f32 0.5, %v928_v53  ;;  %v877_v7 = vmul.f32 0.5, %v873_v2  ;;  %v651_v4 = vadd.f32 %v647_v62, %v3268_v17 }
 0x161   :  { %2673 = vtanh.f32 %v932_v5  ;;  %v655_v57 = vmul.f32 0.5, %v651_v4 }
 0x162   :  { %2675 = vtanh.f32 %v877_v7 }
 0x163   :  { %2518 = vmatpush3.bf16.xpose.msk.msra.mxu0 %vm3113_vm4, %v2516_v3  ;;  %v1027_v3 = vrot.slane %v586_v10, %v3054_v56  ;;  %v3265_v10 = vadd.f32 %v3222_v8, %v595_v58  ;;  %v2662_v8 = vpop.eup %2661 }
 0x164   :  { %2531 = vmatprep.subr.bf16.mxu0 %v2815_v31  ;;  %v2664_v13 = vpop.eup %2663  ;;  %v2532_v24 = vpack.c.bf16 %v2662_v8, %v2656_v36 }
 0x165   :  { %2502 = vmatpush3.bf16.xpose.msk.msra.mxu1 %vm3113_vm4, %v2500_v60  ;;  %v984_v60 = vadd.f32 %v971_v1, %v491_v18  ;;  %v2666_v25 = vpop.eup %2665  ;;  %v643_v44 = vrot.slane %v3265_v10, %v3040_v45  ;;  %v699_v49 = vrot.slane %v3265_v10, %v3042_v46  ;;  %v755_v54 = vrot.slane %v3265_v10, %v3044_v47 }
 0x166   :  { %2519 = vmatprep.subr.bf16.mxu1 %v2815_v31  ;;  %v2668_v58 = vpop.eup %2667  ;;  %v2523_v35 = vpack.c.bf16 %v2666_v25, %v2664_v13  ;;  %v811_v61 = vrot.slane %v3265_v10, %v3046_v48  ;;  %v867_v0 = vrot.slane %v3265_v10, %v3048_v50  ;;  %v923_v53 = vrot.slane %v3265_v10, %v3050_v51 }
 0x167   :  { %v988_v12 = vmul.f32 0.5, %v984_v60  ;;  %v2670_v26 = vpop.eup %2669  ;;  %v650_v1 = vadd.f32 %v643_v44, %v3271_v19  ;;  %v706_v2 = vadd.f32 %v699_v49, %v3271_v19  ;;  %v707_v45 = vadd.f32 %v703_v63, %v3268_v17 }
 0x168   :  { %v2672_v27 = vpop.eup %2671  ;;  %v2535_v28 = vpack.c.bf16 %v2670_v26, %v2668_v58  ;;  %v874_v46 = vadd.f32 %v867_v0, %v3271_v19  ;;  %v930_v60 = vadd.f32 %v923_v53, %v3271_v19  ;;  %v979_v36 = vrot.slane %v3265_v10, %v3052_v55 }
 0x169   :  { %v654_v5 = vmul.f32 0.5, %v650_v1  ;;  %v710_v7 = vmul.f32 0.5, %v706_v2  ;;  %v711_v9 = vmul.f32 0.5, %v707_v45  ;;  %v767_v13 = vmul.f32 0.5, %v763_v22 }
 0x16a   :  { %2333 = vmatmul.mubr.msk.f32.vlgmr.msra.gmra.mrb[18].mxu0 %vm1052_vm3, %v196_v33  ;;  %v1040_v33 = vadd.f32 %v1027_v3, %v491_v18  ;;  %v818_v3 = vadd.f32 %v811_v61, %v3271_v19  ;;  %v934_v15 = vmul.f32 0.5, %v930_v60  ;;  %v1039_v25 = vrot.slane %v3262_v14, %v3054_v56 }
 0x16b   :  { %2370 = vmatprep.mubr.msk.f32.mxu0 %vm2816_vm2, %v2817_v32  ;;  %2533 = vmatpush3.bf16.msra.mxu0 %v2532_v24  ;;  %v2674_v29 = vpop.eup %2673  ;;  %v983_v24 = vrot.slane %v3262_v14, %v3052_v55 }
 0x16c   :  { %2314 = vmatmul.mubr.msk.f32.vlgmr.msra.gmra.mrb[6].mxu1 %vm1052_vm3, %v191_v34  ;;  %v933_v34 = vmul.f32 0.5, %v929_v52  ;;  %v1044_v18 = vmul.f32 0.5, %v1040_v33  ;;  %2534 = vmatprep.subr.bf16.mxu0 %v2815_v31  ;;  %v2676_v30 = vpop.eup %2675  ;;  %v2526_v37 = vpack.c.bf16 %v2674_v29, %v2672_v27  ;;  %v762_v52 = vadd.f32 %v755_v54, %v3271_v19 }
 0x16d   :  { %2351 = vmatprep.mubr.msk.f32.mxu1 %vm2816_vm2, %v2817_v32  ;;  %2521 = vmatpush3.bf16.msra.mxu1 %v2520_v23  ;;  %v875_v23 = vadd.f32 %v871_v20, %v3268_v17  ;;  %v1043_v26 = vadd.f32 %v1039_v25, %v3268_v17 }
 0x16e   :  { %2677 = vtanh.f32 %v933_v34  ;;  %2522 = vmatprep.subr.bf16.mxu1 %v2815_v31  ;;  %v766_v33 = vmul.f32 0.5, %v762_v52  ;;  %v822_v34 = vmul.f32 0.5, %v818_v3 }
 0x16f   :  { %2679 = vtanh.f32 %v988_v12  ;;  %2536 = vmatpush3.bf16.msra.mxu0 %v2535_v28  ;;  %v878_v12 = vmul.f32 0.5, %v874_v46  ;;  %v1047_v55 = vmul.f32 0.5, %v1043_v26  ;;  %v1784_v26 = vld [vmem:[%s3431_s14] sm:$0xff] }
 0x170   :  { %2681 = vtanh.f32 %v1044_v18  ;;  %2537 = vmatprep.subr.bf16.mxu0 %v2815_v31  ;;  %v815_v18 = vrot.slane %v3262_v14, %v3046_v48  ;;  %v986_v48 = vadd.f32 %v979_v36, %v3271_v19 }
 0x171   :  { %2683 = vtanh.f32 %v989_v6  ;;  %2524 = vmatpush3.bf16.msra.mxu1 %v2523_v35  ;;  %v1035_v6 = vrot.slane %v3265_v10, %v3054_v56  ;;  %v987_v35 = vadd.f32 %v983_v24, %v3268_v17 }
 0x172   :  { %2685 = vtanh.f32 %v1045_v21  ;;  %2525 = vmatprep.subr.bf16.mxu1 %v2815_v31  ;;  %v927_v21 = vrot.slane %v3262_v14, %v3050_v51  ;;  %v819_v47 = vadd.f32 %v815_v18, %v3268_v17  ;;  %v990_v51 = vmul.f32 0.5, %v986_v48 }
 0x173   :  { %2687 = vtanh.f32 %v654_v5  ;;  %v1042_v8 = vadd.f32 %v1035_v6, %v3271_v19  ;;  %v879_v19 = vmul.f32 0.5, %v875_v23  ;;  %v991_v29 = vmul.f32 0.5, %v987_v35 }
 0x174   :  { %2689 = vtanh.f32 %v710_v7  ;;  %v931_v10 = vadd.f32 %v927_v21, %v3268_v17  ;;  %v823_v50 = vmul.f32 0.5, %v819_v47 }
 0x175   :  { %2527 = vmatpush3.bf16.msra.mxu1 %v2526_v37  ;;  %2691 = vtanh.f32 %v766_v33  ;;  %v1046_v58 = vmul.f32 0.5, %v1042_v8 }
 0x176   :  { %2528 = vmatprep.subr.bf16.mxu1 %v2815_v31  ;;  %2693 = vtanh.f32 %v822_v34  ;;  %v935_v27 = vmul.f32 0.5, %v931_v10 }
 0x177   :  { %2695 = vtanh.f32 %v655_v57 }
 0x178   :  { %v2678_v38 = vpop.eup %2677  ;;  %2697 = vtanh.f32 %v711_v9 }
 0x179   :  { %v2680_v39 = vpop.eup %2679  ;;  %v2538_v40 = vpack.c.bf16 %v2678_v38, %v2676_v30  ;;  %2699 = vtanh.f32 %v878_v12 }
 0x17a   :  { %v2682_v11 = vpop.eup %2681  ;;  %2701 = vtanh.f32 %v934_v15 }
 0x17b   :  { %v2684_v41 = vpop.eup %2683  ;;  %2539 = vmatpush3.bf16.msra.mxu0 %v2538_v40  ;;  %v2529_v42 = vpack.c.bf16 %v2682_v11, %v2680_v39  ;;  %2703 = vtanh.f32 %v767_v13 }
 0x17c   :  { %v2686_v59 = vpop.eup %2685  ;;  %2540 = vmatprep.subr.bf16.mxu0 %v2815_v31  ;;  %2705 = vtanh.f32 %v823_v50 }
 0x17d   :  { %v2541_v43 = vpack.c.bf16 %v2686_v59, %v2684_v41  ;;  %2530 = vmatpush3.bf16.msra.mxu1 %v2529_v42  ;;  %v3329_v28 = vpop.eup %2687  ;;  %2707 = vtanh.f32 %v990_v51 }
 0x17e   :  { %2543 = vmatprep.subr.bf16.mxu1 %v2815_v31  ;;  %v2690_v30 = vpop.eup %2689  ;;  %2709 = vtanh.f32 %v1046_v58 }
 0x17f   :  { %2542 = vmatpush3.bf16.msra.mxu0 %v2541_v43  ;;  %v3331_v37 = vpop.eup %2691  ;;  %v2544_v56 = vpack.c.bf16 %v2690_v30, %v3329_v28  ;;  %2711 = vtanh.f32 %v879_v19  ;;  %v1787_v30 = vld [vmem:[%s3431_s14 + $0x18] sm:$0xff] }
 0x180   :  { %2555 = vmatprep.subr.bf16.mxu0 %v2815_v31  ;;  %v2694_v14 = vpop.eup %2693  ;;  %2713 = vtanh.f32 %v935_v27  ;;  %v1785_v27 = vld [vmem:[%s3431_s14 + $0x8] sm:$0xff] }
 0x181   :  { %v2696_v38 = vpop.eup %2695  ;;  %v2547_v39 = vpack.c.bf16 %v2694_v14, %v3331_v37  ;;  %2715 = vtanh.f32 %v991_v29  ;;  %v2567_v28 = vpack.c.bf16 %v1785_v27, %v1784_v26  ;;  %v1786_v29 = vld [vmem:[%s3431_s14 + $0x10] sm:$0xff]  ;;  %v1782_v37 = vld [vmem:[%s3430_s13] sm:$0xff] }
 0x182   :  { %v2698_v17 = vpop.eup %2697  ;;  %2717 = vtanh.f32 %v1047_v55  ;;  %v2571_v55 = vpack.c.bf16 %v1787_v30, %v1786_v29 }
 0x183   :  { %v2700_v40 = vpop.eup %2699  ;;  %v2556_v11 = vpack.c.bf16 %v2698_v17, %v2696_v38 }
 0x184   :  { %v2702_v41 = vpop.eup %2701 }
 0x185   :  { %v2704_v42 = vpop.eup %2703  ;;  %v2550_v59 = vpack.c.bf16 %v2702_v41, %v2700_v40 }
 0x186   :  { %v2706_v43 = vpop.eup %2705 }
 0x187   :  { %v2708_v44 = vpop.eup %2707  ;;  %v2559_v49 = vpack.c.bf16 %v2706_v43, %v2704_v42 }
 0x188   :  { %v2710_v54 = vpop.eup %2709 }
 0x189   :  { %v2712_v61 = vpop.eup %2711  ;;  %v2553_v62 = vpack.c.bf16 %v2710_v54, %v2708_v44 }
 0x18a   :  { %v2714_v63 = vpop.eup %2713 }
 0x18b   :  { %v2716_v0 = vpop.eup %2715  ;;  %v2562_v53 = vpack.c.bf16 %v2714_v63, %v2712_v61 }
 0x18c   :  { %v2718_v1 = vpop.eup %2717 }
 0x18d   :  { %v2565_v2 = vpack.c.bf16 %v2718_v1, %v2716_v0 }
 0x21d   :  { %v1243_v52 = vpop.f32.mrb[16].mxu0 }
 0x21e   :  { %v2296_v3 = vpop.f32.mrb[17].mxu0  ;;  %v1442_v60 = vmul.f32 0.17677669, %v1243_v52 }
 0x21f   :  { %v1146_v4 = vpop.f32.mrb[4].mxu1  ;;  %v2735_v3 = vld [vmem:[%s3436_s23] sm:$0xff] }
 0x220   :  { %v1441_v45 = vmul.f32 0.17677669, %v1146_v4  ;;  %v2277_v46 = vpop.f32.mrb[5].mxu1  ;;  %v1449_v7 = vsel %vm1445_vm5, %v1442_v60, -inf  ;;  %v2736_v4 = vld [vmem:[%s3436_s23 + $0x8] sm:$0xff] }
 0x221   :  { %v2738_v46 = vld [vmem:[%s3436_s23 + $0x18] sm:$0xff] }
 0x222   :  { %v1446_v5 = vsel %vm1445_vm5, %v1441_v45, -inf }
 0x223   :  { %1447 = vmax.xlane.f32.xlu0 %v1446_v5 }
 0x227   :  { %1450 = vmax.xlane.f32.xlu0 %v1449_v7 }
 0x23d   :  { %v1437_v33 = vpop.f32.mrb[18].mxu0 }
 0x23e   :  { %v2334_v34 = vpop.f32.mrb[19].mxu0  ;;  %v1444_v15 = vmul.f32 0.17677669, %v1437_v33 }
 0x23f   :  { %v1340_v57 = vpop.f32.mrb[6].mxu1 }
 0x240   :  { %v1443_v9 = vmul.f32 0.17677669, %v1340_v57  ;;  %v2315_v12 = vpop.f32.mrb[7].mxu1  ;;  %v1455_v18 = vsel %vm1445_vm5, %v1444_v15, -inf }
 0x242   :  { %v1452_v16 = vsel %vm1445_vm5, %v1443_v9, -inf }
 0x243   :  { %1453 = vmax.xlane.f32.xlu1 %v1452_v16 }
 0x247   :  { %1456 = vmax.xlane.f32.xlu1 %v1455_v18 }
 0x2b0   :  { %v1448_v36 = vpop.xlane.xlu0 %1447 }
 0x2b1   :  { %v1458_v6 = vsub.f32 %v1441_v45, %v1448_v36  ;;  %v2737_v45 = vld [vmem:[%s3436_s23 + $0x10] sm:$0xff] }
 0x2b3   :  { %v1462_v20 = vmul.f32 1.442695, %v1458_v6 }
 0x2b4   :  { %v1451_v21 = vpop.xlane.xlu0 %1450 }
 0x2b5   :  { %2719 = vpow2.f32 %v1462_v20  ;;  %v1459_v22 = vsub.f32 %v1442_v60, %v1451_v21  ;;  %v2080_v60 = vld [vmem:[%s3432_s15] ss:$0 sm:$0xff]  ;;  %s2783_s15 = scalar_lea.vmem %s1995_s20, 512 }
 0x2b6   :  { %p2784_p2 = scmp.ne.s32.totalorder %s1995_s20, %s2783_s15  ;;  %p2789_p4 = scmp.lt.s32.totalorder %s2783_s15, %s2783_s15 }
 0x2b7   :  { %v1464_v47 = vmul.f32 1.442695, %v1459_v22 }
 0x2b8   :  { %p2790_p5 = por %p2789_p4, %p2788_p3 }
 0x2b9   :  { %2721 = vpow2.f32 %v1464_v47 }
 0x2ba   :  { %p2791_p6 = pnand %p2790_p5, %p2784_p2 }
 0x2bf   :  { %v2720_v48 = vpop.eup %2719 }
 0x2c0   :  { %2352 = vmatmul.mubr.msk.f32.vlgmr.msra.gmra.mrb[8].mxu1 %vm1445_vm5, %v2720_v48  ;;  %v1470_v8 = vsel %vm1445_vm5, %v2720_v48, 0.0 }
 0x2c1   :  { %2545 = vmatpush3.bf16.msra.mxu1 %v2544_v56  ;;  %1471 = vadd.xlane.f32.xlu0 %v1470_v8  ;;  %v1783_v56 = vld [vmem:[%s3430_s13 + $0x8] sm:$0xff] }
 0x2c2   :  { %2546 = vmatprep.subr.bf16.mxu1 %v2815_v31  ;;  %2389 = vmatprep.mubr.msk.f32.mxu1 %vm2816_vm2, %v2817_v32  ;;  %v2575_v14 = vpack.c.bf16 %v1783_v56, %v1782_v37 }
 0x2c3   :  { %v2722_v23 = vpop.eup %2721 }
 0x2c4   :  { %2371 = vmatmul.mubr.msk.f32.vlgmr.msra.gmra.mrb[20].mxu0 %vm1445_vm5, %v2722_v23  ;;  %v1473_v10 = vsel %vm1445_vm5, %v2722_v23, 0.0 }
 0x2c5   :  { %2548 = vmatpush3.bf16.msra.mxu1 %v2547_v39  ;;  %2557 = vmatpush3.bf16.msra.mxu0 %v2556_v11 }
 0x2c6   :  { %1474 = vadd.xlane.f32.xlu1 %v1473_v10  ;;  %2549 = vmatprep.subr.bf16.mxu1 %v2815_v31 }
 0x2c7   :  { %2558 = vmatprep.subr.bf16.mxu0 %v2815_v31  ;;  %2408 = vmatprep.mubr.msk.f32.mxu0 %vm2816_vm2, %v2817_v32 }
 0x2c9   :  { %2551 = vmatpush3.bf16.msra.mxu1 %v2550_v59  ;;  %2560 = vmatpush3.bf16.msra.mxu0 %v2559_v49 }
 0x2ca   :  { %2552 = vmatprep.subr.bf16.mxu1 %v2815_v31  ;;  %2561 = vmatprep.subr.bf16.mxu0 %v2815_v31 }
 0x2cd   :  { %2554 = vmatpush3.bf16.msra.mxu1 %v2553_v62  ;;  %2563 = vmatpush3.bf16.msra.mxu0 %v2562_v53 }
 0x2ce   :  { %2564 = vmatprep.subr.bf16.mxu0 %v2815_v31  ;;  %2568 = vmatprep.subr.bf16.mxu1 %v2567_v28 }
 0x2d0   :  { %v1454_v13 = vpop.xlane.xlu1 %1453 }
 0x2d1   :  { %2566 = vmatpush3.bf16.msra.mxu0 %v2565_v2  ;;  %v1460_v50 = vsub.f32 %v1443_v9, %v1454_v13 }
 0x2d3   :  { %v1466_v51 = vmul.f32 1.442695, %v1460_v50 }
 0x2d4   :  { %v1457_v24 = vpop.xlane.xlu1 %1456 }
 0x2d5   :  { %2723 = vpow2.f32 %v1466_v51  ;;  %v1461_v25 = vsub.f32 %v1444_v15, %v1457_v24 }
 0x2d7   :  { %v1468_v58 = vmul.f32 1.442695, %v1461_v25 }
 0x2d9   :  { %2725 = vpow2.f32 %v1468_v58 }
 0x2df   :  { %v2724_v32 = vpop.eup %2723 }
 0x2e0   :  { %2390 = vmatmul.mubr.msk.f32.vlgmr.msra.gmra.mrb[10].mxu1 %vm1445_vm5, %v2724_v32  ;;  %v1476_v19 = vsel %vm1445_vm5, %v2724_v32, 0.0 }
 0x2e1   :  { %1477 = vadd.xlane.f32.xlu0 %v1476_v19  ;;  %2570 = vmatpush3.bf16.msra.mxu1 %v2567_v28 }
 0x2e2   :  { %2572 = vmatprep.subr.bf16.mxu1 %v2571_v55 }
 0x2e3   :  { %v2726_v35 = vpop.eup %2725 }
 0x2e4   :  { %2409 = vmatmul.mubr.msk.f32.vlgmr.msra.gmra.mrb[22].mxu0 %vm1445_vm5, %v2726_v35  ;;  %v1479_v31 = vsel %vm1445_vm5, %v2726_v35, 0.0 }
 0x2e5   :  { %1480 = vadd.xlane.f32.xlu1 %v1479_v31  ;;  %2574 = vmatpush3.bf16.msra.mxu1 %v2571_v55 }
 0x2e6   :  { %2576 = vmatprep.subr.bf16.mxu1 %v2575_v14 }
 0x34e   :  { %v1472_v38 = vpop.xlane.xlu0 %1471 }
 0x34f   :  { %2727 = vrcp.f32 %v1472_v38 }
 0x353   :  { %v1475_v39 = vpop.xlane.xlu1 %1474 }
 0x354   :  { %2729 = vrcp.f32 %v1475_v39 }
 0x359   :  { %v2728_v17 = vpop.eup %2727 }
 0x35e   :  { %v2730_v42 = vpop.eup %2729 }
 0x36e   :  { %v1478_v49 = vpop.xlane.xlu0 %1477 }
 0x36f   :  { %2731 = vrcp.f32 %v1478_v49 }
 0x372   :  { %v1481_v54 = vpop.xlane.xlu1 %1480 }
 0x373   :  { %2733 = vrcp.f32 %v1481_v54 }
 0x379   :  { %v2732_v61 = vpop.eup %2731 }
 0x37d   :  { %v2734_v53 = vpop.eup %2733 }
 0x393   :  { %v1551_v40 = vpop.f32.mrb[8].mxu1 }
 0x394   :  { %v1778_v11 = vmul.f32 %v2728_v17, %v1551_v40  ;;  %v2353_v41 = vpop.f32.mrb[9].mxu1 }
 0x396   :  { %2419 = vmatprep.mubr.msk.f32.mxu1 %vm1052_vm3, %v1778_v11 }
 0x397   :  { %v1624_v59 = vpop.f32.mrb[20].mxu0 }
 0x398   :  { %v1779_v43 = vmul.f32 %v2730_v42, %v1624_v59  ;;  %v2372_v44 = vpop.f32.mrb[21].mxu0 }
 0x39a   :  { %2420 = vmatmul.mubr.msk.f32.vlgmr.msra.gmra.mrb[12].mxu1 %vm1052_vm3, %v1779_v43 }
 0x39b   :  { %2578 = vmatpush3.bf16.msra.mxu1 %v2575_v14 }
 0x3b3   :  { %v1697_v62 = vpop.f32.mrb[10].mxu1 }
 0x3b4   :  { %v1780_v63 = vmul.f32 %v2732_v61, %v1697_v62  ;;  %v2391_v0 = vpop.f32.mrb[11].mxu1 }
 0x3b6   :  { %2422 = vmatprep.mubr.msk.f32.mxu1 %vm1052_vm3, %v1780_v63 }
 0x3b7   :  { %v1770_v1 = vpop.f32.mrb[22].mxu0 }
 0x3b8   :  { %v1781_v2 = vmul.f32 %v2734_v53, %v1770_v1  ;;  %v2410_v52 = vpop.f32.mrb[23].mxu0 }
 0x3ba   :  { %2423 = vmatmul.mubr.msk.f32.gmra.mrb[14].mxu1 %vm1052_vm3, %v1781_v2 }
 0x3bb   :  { %2429 = vmatprep.mubr.msk.f32.mxu1 %vm101_vm0, %v2735_v3 }
 0x3be   :  { %2430 = vmatmul.mubr.msk.f32.vlgmr.msra.gmra.mrb[12].mxu1 %vm101_vm0, %v2736_v4 }
 0x3bf   :  { %2432 = vmatprep.mubr.msk.f32.mxu1 %vm101_vm0, %v2737_v45 }
 0x3c2   :  { %2433 = vmatmul.mubr.msk.f32.gmra.mrb[14].mxu1 %vm101_vm0, %v2738_v46 }
 0x491   :  { %v2431_v5 = vpop.f32.mrb[12].mxu1 }
 0x492   :  { %v1978_v7 = vadd.f32 %v2431_v5, %v2080_v60  ;;  %v1951_v33 = vpop.f32.mrb[13].mxu1 }
 0x493   :  { %v1977_v34 = vadd.f32 %v2080_v60, %v1951_v33 }
 0x494   :  { %v1982_v57 = vmax.f32 %v1978_v7, 0.0 }
 0x495   :  { %v1981_v9 = vmax.f32 %v1977_v34, 0.0  ;;  %v2434_v12 = vpop.f32.mrb[14].mxu1 }
 0x496   :  { %1986 = vst.msk [vmem:[#allocation7 + $0x8] sm:$0xff] %vm1052_vm3, %v1982_v57  ;;  %v1980_v15 = vadd.f32 %v2434_v12, %v2080_v60  ;;  %v1961_v16 = vpop.f32.mrb[15].mxu1 }
 0x497   :  { %1985 = vst.msk [vmem:[#allocation7] sm:$0xff] %vm1052_vm3, %v1981_v9  ;;  %v1979_v18 = vadd.f32 %v2080_v60, %v1961_v16 }
 0x498   :  { %v1984_v36 = vmax.f32 %v1980_v15, 0.0 }
 0x499   :  { %v1983_v6 = vmax.f32 %v1979_v18, 0.0 }
 0x49a   :  { %1988 = vst.msk [vmem:[#allocation7 + $0x18] sm:$0xff] %vm1052_vm3, %v1984_v36 }
 0x49b   :  { %1987 = vst.msk [vmem:[#allocation7 + $0x10] sm:$0xff] %vm1052_vm3, %v1983_v6 }
 0x49c   :  { %2794 = shalt.err (!%p2791_p6)
}
 0x49d   :  { %s2795_s25 = scalar_lea.hbm %s3433_s16, 512 }
 0x49e   :  { %p2796_p7 = scmp.ne.s32.totalorder %s3433_s16, %s2795_s25  ;;  %p2799_p8 = scmp.lt.u32.totalorder %s2795_s25, %s3433_s16 }
 0x4a0   :  { %p2801_p9 = pnand %p2799_p8, %p2796_p7 }
 0x4a2   :  { %2804 = shalt.err (!%p2801_p9)
}
 0x4a3   :  { %2000 = dma.vmem_to_hbm [thread:$0]  %s1995_s20, 512, %s3433_s16, [#allocation4], %s2812_s0, %s2812_s0, %s2813_s17  }
 0x4a4   :  { %2809 = dma.done.wait [#allocation4], 512  }
 0x4a5   :  { %2810 = vsyncadd [#allocation4], 4294966784 }
 0x4a6   :  { %2004 = vsyncpa [#allocation3], 1 }
 0x4a7   :  { %2005 = vsyncpa [#allocation6], 1 }
 0x4a8   :  { %2006 = vsyncpa [#allocation4], 1 }

</bundles_post_ra>
